<compile_context>
chip_gen: v5e
topology: v5e:2x2
jax: 0.10.0
libtpu: 0.0.40
codegen_flags: <defaults>
</compile_context>

<pallas_src>
import math

import jax
import jax.numpy as jnp
from jax import lax
from jax.experimental import pallas as pl
from jax.experimental.pallas import tpu as pltpu

# ---------------------------------------------------------------------------
# Model configuration (small synthetic "bert-base"-shaped config)
# ---------------------------------------------------------------------------
VOCAB = 128
MAX_POS = 16
TYPE_VOCAB = 2
HIDDEN = 32
NUM_HEADS = 2
HEAD_DIM = HIDDEN // NUM_HEADS
INTERMEDIATE = 64
NUM_LAYERS = 2
NUM_CLASSES = 4
CLASS_PAD = 128            # lane-dense logits slab width
LN_EPS = 1e-12


# ---------------------------------------------------------------------------
# In-kernel helpers (f32 math)
# ---------------------------------------------------------------------------
def _layer_norm(x, gamma, beta):
    mean = jnp.mean(x, axis=-1, keepdims=True)
    var = jnp.mean((x - mean) ** 2, axis=-1, keepdims=True)
    return (x - mean) * jax.lax.rsqrt(var + LN_EPS) * gamma + beta


def _gelu(x):
    # TODO(synk): HF BERT default is exact erf GELU; tanh approximation used here.
    c = math.sqrt(2.0 / math.pi)
    return 0.5 * x * (1.0 + jnp.tanh(c * (x + 0.044715 * x * x * x)))


# ---------------------------------------------------------------------------
# Per-(batch, layer) grid-step kernel.  Hidden state lives in VMEM scratch.
# ---------------------------------------------------------------------------
def bert_layer_kernel(emb_ref, mask_ref, embg_ref, embb_ref,
                      wqt_ref, bqt_ref, wkt_ref, bkt_ref, wvt_ref, bvt_ref,
                      wo_ref, bo_ref, ln1g_ref, ln1b_ref,
                      w1_ref, b1_ref, w2_ref, b2_ref, ln2g_ref, ln2b_ref,
                      wp_ref, bp_ref, wh_ref, bh_ref,
                      out_ref, x_scratch):
    l = pl.program_id(1)
    S, H = x_scratch.shape
    HD = HEAD_DIM
    scale = 1.0 / math.sqrt(HD)
    bf16 = jnp.bfloat16

    # Layer 0: initialize the resident hidden state from the embedding block.
    @pl.when(l == 0)
    def _():
        x_scratch[...] = _layer_norm(emb_ref[0].astype(jnp.float32),
                                     embg_ref[...], embb_ref[...])

    x = x_scratch[...]                       # [S, H] f32
    bias = mask_ref[0]                       # [1, S] additive attention bias
    xt = x.T.astype(bf16)                    # [H, S]  (single 2-D transpose)

    # Full-width Q/K/V projections, produced directly in transposed
    # (feature-major) layout:  q_t = Wq^T @ x^T  ->  [H, S]
    q_t = jnp.dot(wqt_ref[0], xt, preferred_element_type=jnp.float32) + bqt_ref[0]
    k_t = jnp.dot(wkt_ref[0], xt, preferred_element_type=jnp.float32) + bkt_ref[0]
    v_t = jnp.dot(wvt_ref[0], xt, preferred_element_type=jnp.float32) + bvt_ref[0]
    q_t, k_t, v_t = q_t.astype(bf16), k_t.astype(bf16), v_t.astype(bf16)
    wo = wo_ref[0]                           # [H, H] bf16

    attn = jnp.zeros((S, H), jnp.float32)
    for h in range(NUM_HEADS):               # static; per-head products only
        r0 = h * HD                          # sublane-aligned static offsets
        qh = q_t[r0:r0 + HD, :]              # [HD, S]
        kh = k_t[r0:r0 + HD, :]
        vh = v_t[r0:r0 + HD, :]
        # scores[q,k] = sum_d qh[d,q]*kh[d,k]   (trans_a matmul)
        s = lax.dot_general(qh, kh, (((0,), (0,)), ((), ())),
                            preferred_element_type=jnp.float32) * scale + bias
        m = jnp.max(s, axis=-1, keepdims=True)
        p = jnp.exp(s - m)
        p = p * pl.reciprocal(jnp.sum(p, axis=-1, keepdims=True), approx=True)
        # ctx[q,d] = sum_k p[q,k]*vh[d,k]       (trans_b matmul)
        ctx = lax.dot_general(p.astype(bf16), vh, (((1,), (1,)), ((), ())),
                              preferred_element_type=jnp.float32)      # [S, HD]
        # ctx @ Wo == sum_h ctx_h @ Wo[h*HD:(h+1)*HD, :]  -> no head concat
        attn = attn + jnp.dot(ctx.astype(bf16), wo[r0:r0 + HD, :],
                              preferred_element_type=jnp.float32)

    x = _layer_norm(x + attn + bo_ref[0], ln1g_ref[0], ln1b_ref[0])
    h1 = _gelu(jnp.dot(x.astype(bf16), w1_ref[0],
                       preferred_element_type=jnp.float32) + b1_ref[0])
    h2 = jnp.dot(h1.astype(bf16), w2_ref[0],
                 preferred_element_type=jnp.float32) + b2_ref[0]
    x = _layer_norm(x + h2, ln2g_ref[0], ln2b_ref[0])
    x_scratch[...] = x

    # Last layer: pooler + classification head on the [CLS] row, lane-dense out.
    @pl.when(l == pl.num_programs(1) - 1)
    def _():
        cls = x[0:1, :]                                                 # [1, H]
        pooled = jnp.tanh(jnp.dot(cls.astype(bf16), wp_ref[...],
                                  preferred_element_type=jnp.float32)
                          + bp_ref[...])
        logits = (jnp.dot(pooled.astype(bf16), wh_ref[...],
                          preferred_element_type=jnp.float32) + bh_ref[...])
        out_ref[0] = logits                                             # [1, 128]


# ---------------------------------------------------------------------------
# Cost hint for the fused call
# ---------------------------------------------------------------------------
def _cost_hint(B, S):
    BS = B * S
    per_layer = (4 * 2 * BS * HIDDEN * HIDDEN
                 + 2 * 2 * B * NUM_HEADS * S * S * HEAD_DIM
                 + 2 * 2 * BS * HIDDEN * INTERMEDIATE)
    flops = (NUM_LAYERS * per_layer
             + 2 * B * HIDDEN * HIDDEN + 2 * B * HIDDEN * NUM_CLASSES)
    trans = (NUM_LAYERS * (B * NUM_HEADS * S * S + BS * INTERMEDIATE) + B * HIDDEN)
    return int(flops), int(trans)


# ---------------------------------------------------------------------------
# Parameter init (deterministic, synthetic)
# ---------------------------------------------------------------------------
def init_params(key):
    def normal(key, shape, std=0.02):
        return (std * jax.random.normal(key, shape)).astype(jnp.float32)

    keys = iter(jax.random.split(key, 8 + NUM_LAYERS * 16))
    p = {
        "word_emb": normal(next(keys), (VOCAB, HIDDEN)),
        "pos_emb": normal(next(keys), (MAX_POS, HIDDEN)),
        "type_emb": normal(next(keys), (TYPE_VOCAB, HIDDEN)),
        "emb_ln_g": jnp.ones((1, HIDDEN), jnp.float32),
        "emb_ln_b": jnp.zeros((1, HIDDEN), jnp.float32),
        "pooler_w": normal(next(keys), (HIDDEN, HIDDEN)),
        "pooler_b": jnp.zeros((1, HIDDEN), jnp.float32),
        "head_w": normal(next(keys), (HIDDEN, NUM_CLASSES)),
        "head_b": jnp.zeros((1, NUM_CLASSES), jnp.float32),
        "layers": [],
    }
    for _ in range(NUM_LAYERS):
        lw = {
            "wq": normal(next(keys), (HIDDEN, HIDDEN)),
            "bq": jnp.zeros((1, HIDDEN), jnp.float32),
            "wk": normal(next(keys), (HIDDEN, HIDDEN)),
            "bk": jnp.zeros((1, HIDDEN), jnp.float32),
            "wv": normal(next(keys), (HIDDEN, HIDDEN)),
            "bv": jnp.zeros((1, HIDDEN), jnp.float32),
            "wo": normal(next(keys), (HIDDEN, HIDDEN)),
            "bo": jnp.zeros((1, HIDDEN), jnp.float32),
            "ln1g": jnp.ones((1, HIDDEN), jnp.float32),
            "ln1b": jnp.zeros((1, HIDDEN), jnp.float32),
            "w1": normal(next(keys), (HIDDEN, INTERMEDIATE)),
            "b1": jnp.zeros((1, INTERMEDIATE), jnp.float32),
            "w2": normal(next(keys), (INTERMEDIATE, HIDDEN)),
            "b2": jnp.zeros((1, HIDDEN), jnp.float32),
            "ln2g": jnp.ones((1, HIDDEN), jnp.float32),
            "ln2b": jnp.zeros((1, HIDDEN), jnp.float32),
        }
        p["layers"].append(lw)
    return p


# ---------------------------------------------------------------------------
# Full forward pass (one pallas_call, grid = (batch, layer))
# ---------------------------------------------------------------------------
def bert_classifier_forward(params, input_ids, token_type_ids, attention_mask):
    # TODO(synk): the HuggingFace tokenizer has no Pallas equivalent; the kernel
    # consumes pre-tokenized input_ids / token_type_ids / attention_mask.
    # Embedding-table gathers stay in plain JAX (XLA gather) wrapper-side.
    B, S = input_ids.shape
    bf16 = jnp.bfloat16

    emb = (jnp.take(params["word_emb"], input_ids, axis=0)
           + params["pos_emb"][None, :S, :]
           + jnp.take(params["type_emb"], token_type_ids, axis=0)).astype(jnp.float32)

    # extended attention mask -> additive bias (as in get_extended_txt_attn_mask)
    mask_bias = ((1.0 - attention_mask.astype(jnp.float32)) * -10000.0).reshape(B, 1, S)

    def stack(name, dtype=jnp.float32):
        return jnp.stack([lw[name] for lw in params["layers"]], 0).astype(dtype)

    def stack_t(name, dtype=jnp.float32):           # per-layer transposed
        return jnp.stack([lw[name].T for lw in params["layers"]], 0).astype(dtype)

    wqt, wkt, wvt = stack_t("wq", bf16), stack_t("wk", bf16), stack_t("wv", bf16)
    bqt, bkt, bvt = stack_t("bq"), stack_t("bk"), stack_t("bv")      # [L, H, 1]
    wo, bo = stack("wo", bf16), stack("bo")
    ln1g, ln1b = stack("ln1g"), stack("ln1b")
    w1, b1 = stack("w1", bf16), stack("b1")
    w2, b2 = stack("w2", bf16), stack("b2")
    ln2g, ln2b = stack("ln2g"), stack("ln2b")

    wp = params["pooler_w"].astype(bf16)
    bp = params["pooler_b"]
    wh = (jnp.zeros((HIDDEN, CLASS_PAD), jnp.float32)
          .at[:, :NUM_CLASSES].set(params["head_w"])).astype(bf16)
    bh = (jnp.zeros((1, CLASS_PAD), jnp.float32)
          .at[:, :NUM_CLASSES].set(params["head_b"]))

    args = (emb, mask_bias, params["emb_ln_g"], params["emb_ln_b"],
            wqt, bqt, wkt, bkt, wvt, bvt, wo, bo, ln1g, ln1b,
            w1, b1, w2, b2, ln2g, ln2b, wp, bp, wh, bh)

    def batch_spec(shape):   # varies with batch grid index
        return pl.BlockSpec(shape, lambda b, l: (b, 0, 0))

    def layer_spec(shape):   # streams one layer's block per grid step
        return pl.BlockSpec(shape, lambda b, l: (l, 0, 0))

    def const_spec(shape):   # resident once
        return pl.BlockSpec(shape, lambda b, l: (0, 0))

    in_specs = [
        batch_spec((1, S, HIDDEN)),                 # emb
        batch_spec((1, 1, S)),                      # mask bias
        const_spec((1, HIDDEN)), const_spec((1, HIDDEN)),            # emb LN g,b
        layer_spec((1, HIDDEN, HIDDEN)), layer_spec((1, HIDDEN, 1)),  # WqT, bqT
        layer_spec((1, HIDDEN, HIDDEN)), layer_spec((1, HIDDEN, 1)),  # WkT, bkT
        layer_spec((1, HIDDEN, HIDDEN)), layer_spec((1, HIDDEN, 1)),  # WvT, bvT
        layer_spec((1, HIDDEN, HIDDEN)), layer_spec((1, 1, HIDDEN)),  # Wo, bo
        layer_spec((1, 1, HIDDEN)), layer_spec((1, 1, HIDDEN)),       # LN1 g,b
        layer_spec((1, HIDDEN, INTERMEDIATE)), layer_spec((1, 1, INTERMEDIATE)),
        layer_spec((1, INTERMEDIATE, HIDDEN)), layer_spec((1, 1, HIDDEN)),
        layer_spec((1, 1, HIDDEN)), layer_spec((1, 1, HIDDEN)),       # LN2 g,b
        const_spec((HIDDEN, HIDDEN)), const_spec((1, HIDDEN)),        # pooler
        const_spec((HIDDEN, CLASS_PAD)), const_spec((1, CLASS_PAD)),  # head (padded)
    ]
    out_spec = pl.BlockSpec((1, 1, CLASS_PAD), lambda b, l: (b, 0, 0))

    flops, trans = _cost_hint(B, S)
    bytes_accessed = int(sum(a.size * a.dtype.itemsize for a in args)
                         + B * CLASS_PAD * 4)

    out = pl.pallas_call(
        bert_layer_kernel,
        out_shape=jax.ShapeDtypeStruct((B, 1, CLASS_PAD), jnp.float32),
        grid_spec=pltpu.PrefetchScalarGridSpec(
            num_scalar_prefetch=0,
            grid=(B, NUM_LAYERS),
            in_specs=in_specs,
            out_specs=out_spec,
            scratch_shapes=[pltpu.VMEM((S, HIDDEN), jnp.float32)],
        ),
        compiler_params=pltpu.CompilerParams(
            dimension_semantics=("parallel", "arbitrary"),
            vmem_limit_bytes=48 * 1024 * 1024,
        ),
        cost_estimate=pl.CostEstimate(flops=flops, transcendentals=trans,
                                      bytes_accessed=bytes_accessed),
    )(*args)
    return out[:, 0, :NUM_CLASSES]


# ---------------------------------------------------------------------------
# Pure-JAX f32 reference (for correctness check)
# ---------------------------------------------------------------------------
def reference_forward(params, input_ids, token_type_ids, attention_mask):
    B, S = input_ids.shape
    x = (jnp.take(params["word_emb"], input_ids, axis=0)
         + params["pos_emb"][None, :S, :]
         + jnp.take(params["type_emb"], token_type_ids, axis=0))

    def ln(v, g, b):
        m = jnp.mean(v, -1, keepdims=True)
        var = jnp.mean((v - m) ** 2, -1, keepdims=True)
        return (v - m) * jax.lax.rsqrt(var + LN_EPS) * g + b

    x = ln(x, params["emb_ln_g"], params["emb_ln_b"])
    bias = ((1.0 - attention_mask.astype(jnp.float32)) * -10000.0)[:, None, None, :]

    for lw in params["layers"]:
        q = x @ lw["wq"] + lw["bq"]
        k = x @ lw["wk"] + lw["bk"]
        v = x @ lw["wv"] + lw["bv"]

        def split(t):
            return t.reshape(B, S, NUM_HEADS, HEAD_DIM).transpose(0, 2, 1, 3)

        qh, kh, vh = split(q), split(k), split(v)
        scores = jnp.einsum("bhqd,bhkd->bhqk", qh, kh) / math.sqrt(HEAD_DIM) + bias
        p = jax.nn.softmax(scores, axis=-1)
        ctx = jnp.einsum("bhqk,bhkd->bhqd", p, vh).transpose(0, 2, 1, 3).reshape(B, S, HIDDEN)
        x = ln(x + ctx @ lw["wo"] + lw["bo"], lw["ln1g"], lw["ln1b"])
        c = math.sqrt(2.0 / math.pi)
        h1 = x @ lw["w1"] + lw["b1"]
        h1 = 0.5 * h1 * (1.0 + jnp.tanh(c * (h1 + 0.044715 * h1 ** 3)))
        x = ln(x + h1 @ lw["w2"] + lw["b2"], lw["ln2g"], lw["ln2b"])

    pooled = jnp.tanh(x[:, 0, :] @ params["pooler_w"] + params["pooler_b"])
    return pooled @ params["head_w"] + params["head_b"]


# ---------------------------------------------------------------------------
if __name__ == "__main__":
    key = jax.random.PRNGKey(0)
    pkey, ikey, tkey = jax.random.split(key, 3)

    B, S = 2, 8
    params = init_params(pkey)
    input_ids = jax.random.randint(ikey, (B, S), 0, VOCAB, dtype=jnp.int32)
    token_type_ids = jnp.zeros((B, S), jnp.int32)
    # mask the last two tokens of the second sequence (simulated padding)
    attention_mask = jnp.ones((B, S), jnp.int32).at[1, -2:].set(0)

    logits = bert_classifier_forward(params, input_ids, token_type_ids, attention_mask)
    logits = jax.block_until_ready(logits)

    ref = reference_forward(params, input_ids, token_type_ids, attention_mask)
    assert logits.shape == (B, NUM_CLASSES)
    # bf16 MXU operands vs f32 reference -> slightly looser tolerance
    assert jnp.allclose(logits, ref, rtol=5e-3, atol=5e-3), (logits, ref)

    print("KERNEL_OK")
</pallas_src>

<mosaic_0001>
module attributes {stable_mosaic.version = 11 : i64} {
  func.func @bert_layer_kernel(%arg0: i32, %arg1: i32, %arg2: memref<1x8x32xf32, #tpu.memory_space<vmem>>, %arg3: memref<1x1x8xf32, #tpu.memory_space<vmem>>, %arg4: memref<1x32xf32, #tpu.memory_space<vmem>>, %arg5: memref<1x32xf32, #tpu.memory_space<vmem>>, %arg6: memref<1x32x32xbf16, #tpu.memory_space<vmem>>, %arg7: memref<1x32x1xf32, #tpu.memory_space<vmem>>, %arg8: memref<1x32x32xbf16, #tpu.memory_space<vmem>>, %arg9: memref<1x32x1xf32, #tpu.memory_space<vmem>>, %arg10: memref<1x32x32xbf16, #tpu.memory_space<vmem>>, %arg11: memref<1x32x1xf32, #tpu.memory_space<vmem>>, %arg12: memref<1x32x32xbf16, #tpu.memory_space<vmem>>, %arg13: memref<1x1x32xf32, #tpu.memory_space<vmem>>, %arg14: memref<1x1x32xf32, #tpu.memory_space<vmem>>, %arg15: memref<1x1x32xf32, #tpu.memory_space<vmem>>, %arg16: memref<1x32x64xbf16, #tpu.memory_space<vmem>>, %arg17: memref<1x1x64xf32, #tpu.memory_space<vmem>>, %arg18: memref<1x64x32xbf16, #tpu.memory_space<vmem>>, %arg19: memref<1x1x32xf32, #tpu.memory_space<vmem>>, %arg20: memref<1x1x32xf32, #tpu.memory_space<vmem>>, %arg21: memref<1x1x32xf32, #tpu.memory_space<vmem>>, %arg22: memref<32x32xbf16, #tpu.memory_space<vmem>>, %arg23: memref<1x32xf32, #tpu.memory_space<vmem>>, %arg24: memref<32x128xbf16, #tpu.memory_space<vmem>>, %arg25: memref<1x128xf32, #tpu.memory_space<vmem>>, %arg26: memref<1x1x128xf32, #tpu.memory_space<vmem>>, %arg27: memref<8x32xf32, #tpu.memory_space<vmem>>) attributes {dimension_semantics = [#tpu.dimension_semantics<parallel>, #tpu.dimension_semantics<arbitrary>], iteration_bounds = array<i64: 2, 2>, scalar_prefetch = 0 : i64, scratch_operands = 1 : i64, tpu.core_type = #tpu.core_type<tc>, window_params = [{transform_indices = @transform_0, window_bounds = array<i64: 1, 8, 32>}, {transform_indices = @transform_1, window_bounds = array<i64: 1, 1, 8>}, {pipeline_mode = #tpu.pipeline_mode<synchronous>, transform_indices = @transform_2, window_bounds = array<i64: 1, 32>}, {pipeline_mode = #tpu.pipeline_mode<synchronous>, transform_indices = @transform_3, window_bounds = array<i64: 1, 32>}, {transform_indices = @transform_4, window_bounds = array<i64: 1, 32, 32>}, {transform_indices = @transform_5, window_bounds = array<i64: 1, 32, 1>}, {transform_indices = @transform_6, window_bounds = array<i64: 1, 32, 32>}, {transform_indices = @transform_7, window_bounds = array<i64: 1, 32, 1>}, {transform_indices = @transform_8, window_bounds = array<i64: 1, 32, 32>}, {transform_indices = @transform_9, window_bounds = array<i64: 1, 32, 1>}, {transform_indices = @transform_10, window_bounds = array<i64: 1, 32, 32>}, {transform_indices = @transform_11, window_bounds = array<i64: 1, 1, 32>}, {transform_indices = @transform_12, window_bounds = array<i64: 1, 1, 32>}, {transform_indices = @transform_13, window_bounds = array<i64: 1, 1, 32>}, {transform_indices = @transform_14, window_bounds = array<i64: 1, 32, 64>}, {transform_indices = @transform_15, window_bounds = array<i64: 1, 1, 64>}, {transform_indices = @transform_16, window_bounds = array<i64: 1, 64, 32>}, {transform_indices = @transform_17, window_bounds = array<i64: 1, 1, 32>}, {transform_indices = @transform_18, window_bounds = array<i64: 1, 1, 32>}, {transform_indices = @transform_19, window_bounds = array<i64: 1, 1, 32>}, {pipeline_mode = #tpu.pipeline_mode<synchronous>, transform_indices = @transform_20, window_bounds = array<i64: 32, 32>}, {pipeline_mode = #tpu.pipeline_mode<synchronous>, transform_indices = @transform_21, window_bounds = array<i64: 1, 32>}, {pipeline_mode = #tpu.pipeline_mode<synchronous>, transform_indices = @transform_22, window_bounds = array<i64: 32, 128>}, {pipeline_mode = #tpu.pipeline_mode<synchronous>, transform_indices = @transform_23, window_bounds = array<i64: 1, 128>}, {transform_indices = @transform_24, window_bounds = array<i64: 1, 1, 128>}]} {
    %c0_i32 = arith.constant 0 : i32
    %0 = arith.cmpi eq, %arg1, %c0_i32 : i32
    %1 = arith.extui %0 : i1 to i32
    %c0_i32_0 = arith.constant 0 : i32
    %2 = arith.cmpi ne, %1, %c0_i32_0 : i32
    scf.if %2 {
      %c0_87 = arith.constant 0 : index
      %c0_88 = arith.constant 0 : index
      %c0_89 = arith.constant 0 : index
      %174 = vector.load %arg2[%c0_87, %c0_88, %c0_89] : memref<1x8x32xf32, #tpu.memory_space<vmem>>, vector<1x8x32xf32>
      %175 = vector.shape_cast %174 : vector<1x8x32xf32> to vector<8x32xf32>
      %c0_90 = arith.constant 0 : index
      %c0_91 = arith.constant 0 : index
      %176 = vector.load %arg4[%c0_90, %c0_91] : memref<1x32xf32, #tpu.memory_space<vmem>>, vector<1x32xf32>
      %c0_92 = arith.constant 0 : index
      %c0_93 = arith.constant 0 : index
      %177 = vector.load %arg5[%c0_92, %c0_93] : memref<1x32xf32, #tpu.memory_space<vmem>>, vector<1x32xf32>
      %cst_94 = arith.constant dense<0.000000e+00> : vector<8xf32>
      %178 = vector.multi_reduction <add>, %175, %cst_94 [1] : vector<8x32xf32> to vector<8xf32>
      %179 = vector.shape_cast %178 : vector<8xf32> to vector<8x1xf32>
      %cst_95 = arith.constant 3.200000e+01 : f32
      %180 = vector.broadcast %cst_95 : f32 to vector<8x1xf32>
      %181 = arith.divf %179, %180 : vector<8x1xf32>
      %182 = vector.broadcast %181 : vector<8x1xf32> to vector<8x32xf32>
      %183 = arith.subf %175, %182 : vector<8x32xf32>
      %184 = arith.mulf %183, %183 : vector<8x32xf32>
      %cst_96 = arith.constant dense<0.000000e+00> : vector<8xf32>
      %185 = vector.multi_reduction <add>, %184, %cst_96 [1] : vector<8x32xf32> to vector<8xf32>
      %186 = vector.shape_cast %185 : vector<8xf32> to vector<8x1xf32>
      %cst_97 = arith.constant 3.200000e+01 : f32
      %187 = vector.broadcast %cst_97 : f32 to vector<8x1xf32>
      %188 = arith.divf %186, %187 : vector<8x1xf32>
      %189 = vector.broadcast %181 : vector<8x1xf32> to vector<8x32xf32>
      %190 = arith.subf %175, %189 : vector<8x32xf32>
      %cst_98 = arith.constant 9.99999996E-13 : f32
      %191 = vector.broadcast %cst_98 : f32 to vector<8x1xf32>
      %192 = arith.addf %188, %191 : vector<8x1xf32>
      %193 = math.rsqrt %192 : vector<8x1xf32>
      %194 = vector.broadcast %193 : vector<8x1xf32> to vector<8x32xf32>
      %195 = arith.mulf %190, %194 : vector<8x32xf32>
      %196 = vector.broadcast %176 : vector<1x32xf32> to vector<8x32xf32>
      %197 = arith.mulf %195, %196 : vector<8x32xf32>
      %198 = vector.broadcast %177 : vector<1x32xf32> to vector<8x32xf32>
      %199 = arith.addf %197, %198 : vector<8x32xf32>
      %c0_99 = arith.constant 0 : index
      %c0_100 = arith.constant 0 : index
      %200 = vector.load %arg27[%c0_99, %c0_100] : memref<8x32xf32, #tpu.memory_space<vmem>>, vector<8x32xf32>
      tpu.vector_store %arg27[%c0_99, %c0_100], %199 {strides = array<i32>} : memref<8x32xf32, #tpu.memory_space<vmem>>, vector<8x32xf32>,
    } else {
    }
    %c0 = arith.constant 0 : index
    %c0_1 = arith.constant 0 : index
    %3 = vector.load %arg27[%c0, %c0_1] : memref<8x32xf32, #tpu.memory_space<vmem>>, vector<8x32xf32>
    %c0_2 = arith.constant 0 : index
    %c0_3 = arith.constant 0 : index
    %c0_4 = arith.constant 0 : index
    %4 = vector.load %arg3[%c0_2, %c0_3, %c0_4] : memref<1x1x8xf32, #tpu.memory_space<vmem>>, vector<1x1x8xf32>
    %5 = vector.shape_cast %4 : vector<1x1x8xf32> to vector<1x8xf32>
    %6 = tpu.transpose %3, [1, 0] : vector<8x32xf32> -> vector<32x8xf32>
    %7 = arith.truncf %6 : vector<32x8xf32> to vector<32x8xbf16>
    %c0_5 = arith.constant 0 : index
    %c0_6 = arith.constant 0 : index
    %c0_7 = arith.constant 0 : index
    %8 = vector.load %arg6[%c0_5, %c0_6, %c0_7] : memref<1x32x32xbf16, #tpu.memory_space<vmem>>, vector<1x32x32xbf16>
    %9 = vector.shape_cast %8 : vector<1x32x32xbf16> to vector<32x32xbf16>
    %cst = arith.constant dense<0.000000e+00> : vector<32x8xf32>
    %10 = tpu.matmul %9, %7, %cst {dimension_numbers = #tpu.dot_dimension_numbers<[1], [0], [0], [1], [0, 0, 1, 1], [], []>} : vector<32x32xbf16>, vector<32x8xbf16>, vector<32x8xf32> -> vector<32x8xf32>
    %c0_8 = arith.constant 0 : index
    %c0_9 = arith.constant 0 : index
    %c0_10 = arith.constant 0 : index
    %11 = vector.load %arg7[%c0_8, %c0_9, %c0_10] : memref<1x32x1xf32, #tpu.memory_space<vmem>>, vector<1x32x1xf32>
    %12 = vector.shape_cast %11 : vector<1x32x1xf32> to vector<32x1xf32>
    %13 = vector.broadcast %12 : vector<32x1xf32> to vector<32x8xf32>
    %14 = arith.addf %10, %13 : vector<32x8xf32>
    %c0_11 = arith.constant 0 : index
    %c0_12 = arith.constant 0 : index
    %c0_13 = arith.constant 0 : index
    %15 = vector.load %arg8[%c0_11, %c0_12, %c0_13] : memref<1x32x32xbf16, #tpu.memory_space<vmem>>, vector<1x32x32xbf16>
    %16 = vector.shape_cast %15 : vector<1x32x32xbf16> to vector<32x32xbf16>
    %cst_14 = arith.constant dense<0.000000e+00> : vector<32x8xf32>
    %17 = tpu.matmul %16, %7, %cst_14 {dimension_numbers = #tpu.dot_dimension_numbers<[1], [0], [0], [1], [0, 0, 1, 1], [], []>} : vector<32x32xbf16>, vector<32x8xbf16>, vector<32x8xf32> -> vector<32x8xf32>
    %c0_15 = arith.constant 0 : index
    %c0_16 = arith.constant 0 : index
    %c0_17 = arith.constant 0 : index
    %18 = vector.load %arg9[%c0_15, %c0_16, %c0_17] : memref<1x32x1xf32, #tpu.memory_space<vmem>>, vector<1x32x1xf32>
    %19 = vector.shape_cast %18 : vector<1x32x1xf32> to vector<32x1xf32>
    %20 = vector.broadcast %19 : vector<32x1xf32> to vector<32x8xf32>
    %21 = arith.addf %17, %20 : vector<32x8xf32>
    %c0_18 = arith.constant 0 : index
    %c0_19 = arith.constant 0 : index
    %c0_20 = arith.constant 0 : index
    %22 = vector.load %arg10[%c0_18, %c0_19, %c0_20] : memref<1x32x32xbf16, #tpu.memory_space<vmem>>, vector<1x32x32xbf16>
    %23 = vector.shape_cast %22 : vector<1x32x32xbf16> to vector<32x32xbf16>
    %cst_21 = arith.constant dense<0.000000e+00> : vector<32x8xf32>
    %24 = tpu.matmul %23, %7, %cst_21 {dimension_numbers = #tpu.dot_dimension_numbers<[1], [0], [0], [1], [0, 0, 1, 1], [], []>} : vector<32x32xbf16>, vector<32x8xbf16>, vector<32x8xf32> -> vector<32x8xf32>
    %c0_22 = arith.constant 0 : index
    %c0_23 = arith.constant 0 : index
    %c0_24 = arith.constant 0 : index
    %25 = vector.load %arg11[%c0_22, %c0_23, %c0_24] : memref<1x32x1xf32, #tpu.memory_space<vmem>>, vector<1x32x1xf32>
    %26 = vector.shape_cast %25 : vector<1x32x1xf32> to vector<32x1xf32>
    %27 = vector.broadcast %26 : vector<32x1xf32> to vector<32x8xf32>
    %28 = arith.addf %24, %27 : vector<32x8xf32>
    %29 = arith.truncf %14 : vector<32x8xf32> to vector<32x8xbf16>
    %30 = arith.truncf %21 : vector<32x8xf32> to vector<32x8xbf16>
    %31 = arith.truncf %28 : vector<32x8xf32> to vector<32x8xbf16>
    %c0_25 = arith.constant 0 : index
    %c0_26 = arith.constant 0 : index
    %c0_27 = arith.constant 0 : index
    %32 = vector.load %arg12[%c0_25, %c0_26, %c0_27] : memref<1x32x32xbf16, #tpu.memory_space<vmem>>, vector<1x32x32xbf16>
    %33 = vector.shape_cast %32 : vector<1x32x32xbf16> to vector<32x32xbf16>
    %cst_28 = arith.constant 0.000000e+00 : f32
    %34 = vector.broadcast %cst_28 : f32 to vector<8x32xf32>
    %35 = vector.extract_strided_slice %29 {offsets = [0, 0], sizes = [16, 8], strides = [1, 1]} : vector<32x8xbf16> to vector<16x8xbf16>
    %36 = vector.extract_strided_slice %30 {offsets = [0, 0], sizes = [16, 8], strides = [1, 1]} : vector<32x8xbf16> to vector<16x8xbf16>
    %37 = vector.extract_strided_slice %31 {offsets = [0, 0], sizes = [16, 8], strides = [1, 1]} : vector<32x8xbf16> to vector<16x8xbf16>
    %cst_29 = arith.constant dense<0.000000e+00> : vector<8x8xf32>
    %38 = tpu.matmul %35, %36, %cst_29 {dimension_numbers = #tpu.dot_dimension_numbers<[0], [0], [1], [1], [0, 1, 1, 1], [], []>} : vector<16x8xbf16>, vector<16x8xbf16>, vector<8x8xf32> -> vector<8x8xf32>
    %cst_30 = arith.constant 2.500000e-01 : f32
    %39 = vector.broadcast %cst_30 : f32 to vector<8x8xf32>
    %40 = arith.mulf %38, %39 : vector<8x8xf32>
    %41 = vector.broadcast %5 : vector<1x8xf32> to vector<8x8xf32>
    %42 = arith.addf %40, %41 : vector<8x8xf32>
    %cst_31 = arith.constant dense<0xFF800000> : vector<8xf32>
    %43 = vector.multi_reduction <maximumf>, %42, %cst_31 [1] : vector<8x8xf32> to vector<8xf32>
    %44 = vector.shape_cast %43 : vector<8xf32> to vector<8x1xf32>
    %45 = vector.broadcast %44 : vector<8x1xf32> to vector<8x8xf32>
    %46 = arith.subf %42, %45 : vector<8x8xf32>
    %47 = math.exp %46 : vector<8x8xf32>
    %cst_32 = arith.constant dense<0.000000e+00> : vector<8xf32>
    %48 = vector.multi_reduction <add>, %47, %cst_32 [1] : vector<8x8xf32> to vector<8xf32>
    %49 = vector.shape_cast %48 : vector<8xf32> to vector<8x1xf32>
    %50 = tpu.reciprocal %49 {approx = true} : vector<8x1xf32> -> vector<8x1xf32>
    %51 = vector.broadcast %50 : vector<8x1xf32> to vector<8x8xf32>
    %52 = arith.mulf %47, %51 : vector<8x8xf32>
    %53 = arith.truncf %52 : vector<8x8xf32> to vector<8x8xbf16>
    %cst_33 = arith.constant dense<0.000000e+00> : vector<8x16xf32>
    %54 = tpu.matmul %53, %37, %cst_33 {dimension_numbers = #tpu.dot_dimension_numbers<[1], [1], [0], [0], [0, 0, 1, 0], [], []>} : vector<8x8xbf16>, vector<16x8xbf16>, vector<8x16xf32> -> vector<8x16xf32>
    %55 = arith.truncf %54 : vector<8x16xf32> to vector<8x16xbf16>
    %56 = vector.extract_strided_slice %33 {offsets = [0, 0], sizes = [16, 32], strides = [1, 1]} : vector<32x32xbf16> to vector<16x32xbf16>
    %cst_34 = arith.constant dense<0.000000e+00> : vector<8x32xf32>
    %57 = tpu.matmul %55, %56, %cst_34 {dimension_numbers = #tpu.dot_dimension_numbers<[1], [0], [0], [1], [0, 0, 1, 1], [], []>} : vector<8x16xbf16>, vector<16x32xbf16>, vector<8x32xf32> -> vector<8x32xf32>
    %58 = arith.addf %34, %57 : vector<8x32xf32>
    %59 = vector.extract_strided_slice %29 {offsets = [16, 0], sizes = [16, 8], strides = [1, 1]} : vector<32x8xbf16> to vector<16x8xbf16>
    %60 = vector.extract_strided_slice %30 {offsets = [16, 0], sizes = [16, 8], strides = [1, 1]} : vector<32x8xbf16> to vector<16x8xbf16>
    %61 = vector.extract_strided_slice %31 {offsets = [16, 0], sizes = [16, 8], strides = [1, 1]} : vector<32x8xbf16> to vector<16x8xbf16>
    %cst_35 = arith.constant dense<0.000000e+00> : vector<8x8xf32>
    %62 = tpu.matmul %59, %60, %cst_35 {dimension_numbers = #tpu.dot_dimension_numbers<[0], [0], [1], [1], [0, 1, 1, 1], [], []>} : vector<16x8xbf16>, vector<16x8xbf16>, vector<8x8xf32> -> vector<8x8xf32>
    %cst_36 = arith.constant 2.500000e-01 : f32
    %63 = vector.broadcast %cst_36 : f32 to vector<8x8xf32>
    %64 = arith.mulf %62, %63 : vector<8x8xf32>
    %65 = vector.broadcast %5 : vector<1x8xf32> to vector<8x8xf32>
    %66 = arith.addf %64, %65 : vector<8x8xf32>
    %cst_37 = arith.constant dense<0xFF800000> : vector<8xf32>
    %67 = vector.multi_reduction <maximumf>, %66, %cst_37 [1] : vector<8x8xf32> to vector<8xf32>
    %68 = vector.shape_cast %67 : vector<8xf32> to vector<8x1xf32>
    %69 = vector.broadcast %68 : vector<8x1xf32> to vector<8x8xf32>
    %70 = arith.subf %66, %69 : vector<8x8xf32>
    %71 = math.exp %70 : vector<8x8xf32>
    %cst_38 = arith.constant dense<0.000000e+00> : vector<8xf32>
    %72 = vector.multi_reduction <add>, %71, %cst_38 [1] : vector<8x8xf32> to vector<8xf32>
    %73 = vector.shape_cast %72 : vector<8xf32> to vector<8x1xf32>
    %74 = tpu.reciprocal %73 {approx = true} : vector<8x1xf32> -> vector<8x1xf32>
    %75 = vector.broadcast %74 : vector<8x1xf32> to vector<8x8xf32>
    %76 = arith.mulf %71, %75 : vector<8x8xf32>
    %77 = arith.truncf %76 : vector<8x8xf32> to vector<8x8xbf16>
    %cst_39 = arith.constant dense<0.000000e+00> : vector<8x16xf32>
    %78 = tpu.matmul %77, %61, %cst_39 {dimension_numbers = #tpu.dot_dimension_numbers<[1], [1], [0], [0], [0, 0, 1, 0], [], []>} : vector<8x8xbf16>, vector<16x8xbf16>, vector<8x16xf32> -> vector<8x16xf32>
    %79 = arith.truncf %78 : vector<8x16xf32> to vector<8x16xbf16>
    %80 = vector.extract_strided_slice %33 {offsets = [16, 0], sizes = [16, 32], strides = [1, 1]} : vector<32x32xbf16> to vector<16x32xbf16>
    %cst_40 = arith.constant dense<0.000000e+00> : vector<8x32xf32>
    %81 = tpu.matmul %79, %80, %cst_40 {dimension_numbers = #tpu.dot_dimension_numbers<[1], [0], [0], [1], [0, 0, 1, 1], [], []>} : vector<8x16xbf16>, vector<16x32xbf16>, vector<8x32xf32> -> vector<8x32xf32>
    %82 = arith.addf %58, %81 : vector<8x32xf32>
    %83 = arith.addf %3, %82 : vector<8x32xf32>
    %c0_41 = arith.constant 0 : index
    %c0_42 = arith.constant 0 : index
    %c0_43 = arith.constant 0 : index
    %84 = vector.load %arg13[%c0_41, %c0_42, %c0_43] : memref<1x1x32xf32, #tpu.memory_space<vmem>>, vector<1x1x32xf32>
    %85 = vector.shape_cast %84 : vector<1x1x32xf32> to vector<1x32xf32>
    %86 = vector.broadcast %85 : vector<1x32xf32> to vector<8x32xf32>
    %87 = arith.addf %83, %86 : vector<8x32xf32>
    %c0_44 = arith.constant 0 : index
    %c0_45 = arith.constant 0 : index
    %c0_46 = arith.constant 0 : index
    %88 = vector.load %arg14[%c0_44, %c0_45, %c0_46] : memref<1x1x32xf32, #tpu.memory_space<vmem>>, vector<1x1x32xf32>
    %89 = vector.shape_cast %88 : vector<1x1x32xf32> to vector<1x32xf32>
    %c0_47 = arith.constant 0 : index
    %c0_48 = arith.constant 0 : index
    %c0_49 = arith.constant 0 : index
    %90 = vector.load %arg15[%c0_47, %c0_48, %c0_49] : memref<1x1x32xf32, #tpu.memory_space<vmem>>, vector<1x1x32xf32>
    %91 = vector.shape_cast %90 : vector<1x1x32xf32> to vector<1x32xf32>
    %cst_50 = arith.constant dense<0.000000e+00> : vector<8xf32>
    %92 = vector.multi_reduction <add>, %87, %cst_50 [1] : vector<8x32xf32> to vector<8xf32>
    %93 = vector.shape_cast %92 : vector<8xf32> to vector<8x1xf32>
    %cst_51 = arith.constant 3.200000e+01 : f32
    %94 = vector.broadcast %cst_51 : f32 to vector<8x1xf32>
    %95 = arith.divf %93, %94 : vector<8x1xf32>
    %96 = vector.broadcast %95 : vector<8x1xf32> to vector<8x32xf32>
    %97 = arith.subf %87, %96 : vector<8x32xf32>
    %98 = arith.mulf %97, %97 : vector<8x32xf32>
    %cst_52 = arith.constant dense<0.000000e+00> : vector<8xf32>
    %99 = vector.multi_reduction <add>, %98, %cst_52 [1] : vector<8x32xf32> to vector<8xf32>
    %100 = vector.shape_cast %99 : vector<8xf32> to vector<8x1xf32>
    %cst_53 = arith.constant 3.200000e+01 : f32
    %101 = vector.broadcast %cst_53 : f32 to vector<8x1xf32>
    %102 = arith.divf %100, %101 : vector<8x1xf32>
    %103 = vector.broadcast %95 : vector<8x1xf32> to vector<8x32xf32>
    %104 = arith.subf %87, %103 : vector<8x32xf32>
    %cst_54 = arith.constant 9.99999996E-13 : f32
    %105 = vector.broadcast %cst_54 : f32 to vector<8x1xf32>
    %106 = arith.addf %102, %105 : vector<8x1xf32>
    %107 = math.rsqrt %106 : vector<8x1xf32>
    %108 = vector.broadcast %107 : vector<8x1xf32> to vector<8x32xf32>
    %109 = arith.mulf %104, %108 : vector<8x32xf32>
    %110 = vector.broadcast %89 : vector<1x32xf32> to vector<8x32xf32>
    %111 = arith.mulf %109, %110 : vector<8x32xf32>
    %112 = vector.broadcast %91 : vector<1x32xf32> to vector<8x32xf32>
    %113 = arith.addf %111, %112 : vector<8x32xf32>
    %114 = arith.truncf %113 : vector<8x32xf32> to vector<8x32xbf16>
    %c0_55 = arith.constant 0 : index
    %c0_56 = arith.constant 0 : index
    %c0_57 = arith.constant 0 : index
    %115 = vector.load %arg16[%c0_55, %c0_56, %c0_57] : memref<1x32x64xbf16, #tpu.memory_space<vmem>>, vector<1x32x64xbf16>
    %116 = vector.shape_cast %115 : vector<1x32x64xbf16> to vector<32x64xbf16>
    %cst_58 = arith.constant dense<0.000000e+00> : vector<8x64xf32>
    %117 = tpu.matmul %114, %116, %cst_58 {dimension_numbers = #tpu.dot_dimension_numbers<[1], [0], [0], [1], [0, 0, 1, 1], [], []>} : vector<8x32xbf16>, vector<32x64xbf16>, vector<8x64xf32> -> vector<8x64xf32>
    %c0_59 = arith.constant 0 : index
    %c0_60 = arith.constant 0 : index
    %c0_61 = arith.constant 0 : index
    %118 = vector.load %arg17[%c0_59, %c0_60, %c0_61] : memref<1x1x64xf32, #tpu.memory_space<vmem>>, vector<1x1x64xf32>
    %119 = vector.shape_cast %118 : vector<1x1x64xf32> to vector<1x64xf32>
    %120 = vector.broadcast %119 : vector<1x64xf32> to vector<8x64xf32>
    %121 = arith.addf %117, %120 : vector<8x64xf32>
    %cst_62 = arith.constant 5.000000e-01 : f32
    %122 = vector.broadcast %cst_62 : f32 to vector<8x64xf32>
    %123 = arith.mulf %122, %121 : vector<8x64xf32>
    %cst_63 = arith.constant 4.471500e-02 : f32
    %124 = vector.broadcast %cst_63 : f32 to vector<8x64xf32>
    %125 = arith.mulf %124, %121 : vector<8x64xf32>
    %126 = arith.mulf %125, %121 : vector<8x64xf32>
    %127 = arith.mulf %126, %121 : vector<8x64xf32>
    %128 = arith.addf %121, %127 : vector<8x64xf32>
    %cst_64 = arith.constant 0.797884583 : f32
    %129 = vector.broadcast %cst_64 : f32 to vector<8x64xf32>
    %130 = arith.mulf %129, %128 : vector<8x64xf32>
    %131 = math.tanh %130 : vector<8x64xf32>
    %cst_65 = arith.constant 1.000000e+00 : f32
    %132 = vector.broadcast %cst_65 : f32 to vector<8x64xf32>
    %133 = arith.addf %132, %131 : vector<8x64xf32>
    %134 = arith.mulf %123, %133 : vector<8x64xf32>
    %135 = arith.truncf %134 : vector<8x64xf32> to vector<8x64xbf16>
    %c0_66 = arith.constant 0 : index
    %c0_67 = arith.constant 0 : index
    %c0_68 = arith.constant 0 : index
    %136 = vector.load %arg18[%c0_66, %c0_67, %c0_68] : memref<1x64x32xbf16, #tpu.memory_space<vmem>>, vector<1x64x32xbf16>
    %137 = vector.shape_cast %136 : vector<1x64x32xbf16> to vector<64x32xbf16>
    %cst_69 = arith.constant dense<0.000000e+00> : vector<8x32xf32>
    %138 = tpu.matmul %135, %137, %cst_69 {dimension_numbers = #tpu.dot_dimension_numbers<[1], [0], [0], [1], [0, 0, 1, 1], [], []>} : vector<8x64xbf16>, vector<64x32xbf16>, vector<8x32xf32> -> vector<8x32xf32>
    %c0_70 = arith.constant 0 : index
    %c0_71 = arith.constant 0 : index
    %c0_72 = arith.constant 0 : index
    %139 = vector.load %arg19[%c0_70, %c0_71, %c0_72] : memref<1x1x32xf32, #tpu.memory_space<vmem>>, vector<1x1x32xf32>
    %140 = vector.shape_cast %139 : vector<1x1x32xf32> to vector<1x32xf32>
    %141 = vector.broadcast %140 : vector<1x32xf32> to vector<8x32xf32>
    %142 = arith.addf %138, %141 : vector<8x32xf32>
    %143 = arith.addf %113, %142 : vector<8x32xf32>
    %c0_73 = arith.constant 0 : index
    %c0_74 = arith.constant 0 : index
    %c0_75 = arith.constant 0 : index
    %144 = vector.load %arg20[%c0_73, %c0_74, %c0_75] : memref<1x1x32xf32, #tpu.memory_space<vmem>>, vector<1x1x32xf32>
    %145 = vector.shape_cast %144 : vector<1x1x32xf32> to vector<1x32xf32>
    %c0_76 = arith.constant 0 : index
    %c0_77 = arith.constant 0 : index
    %c0_78 = arith.constant 0 : index
    %146 = vector.load %arg21[%c0_76, %c0_77, %c0_78] : memref<1x1x32xf32, #tpu.memory_space<vmem>>, vector<1x1x32xf32>
    %147 = vector.shape_cast %146 : vector<1x1x32xf32> to vector<1x32xf32>
    %cst_79 = arith.constant dense<0.000000e+00> : vector<8xf32>
    %148 = vector.multi_reduction <add>, %143, %cst_79 [1] : vector<8x32xf32> to vector<8xf32>
    %149 = vector.shape_cast %148 : vector<8xf32> to vector<8x1xf32>
    %cst_80 = arith.constant 3.200000e+01 : f32
    %150 = vector.broadcast %cst_80 : f32 to vector<8x1xf32>
    %151 = arith.divf %149, %150 : vector<8x1xf32>
    %152 = vector.broadcast %151 : vector<8x1xf32> to vector<8x32xf32>
    %153 = arith.subf %143, %152 : vector<8x32xf32>
    %154 = arith.mulf %153, %153 : vector<8x32xf32>
    %cst_81 = arith.constant dense<0.000000e+00> : vector<8xf32>
    %155 = vector.multi_reduction <add>, %154, %cst_81 [1] : vector<8x32xf32> to vector<8xf32>
    %156 = vector.shape_cast %155 : vector<8xf32> to vector<8x1xf32>
    %cst_82 = arith.constant 3.200000e+01 : f32
    %157 = vector.broadcast %cst_82 : f32 to vector<8x1xf32>
    %158 = arith.divf %156, %157 : vector<8x1xf32>
    %159 = vector.broadcast %151 : vector<8x1xf32> to vector<8x32xf32>
    %160 = arith.subf %143, %159 : vector<8x32xf32>
    %cst_83 = arith.constant 9.99999996E-13 : f32
    %161 = vector.broadcast %cst_83 : f32 to vector<8x1xf32>
    %162 = arith.addf %158, %161 : vector<8x1xf32>
    %163 = math.rsqrt %162 : vector<8x1xf32>
    %164 = vector.broadcast %163 : vector<8x1xf32> to vector<8x32xf32>
    %165 = arith.mulf %160, %164 : vector<8x32xf32>
    %166 = vector.broadcast %145 : vector<1x32xf32> to vector<8x32xf32>
    %167 = arith.mulf %165, %166 : vector<8x32xf32>
    %168 = vector.broadcast %147 : vector<1x32xf32> to vector<8x32xf32>
    %169 = arith.addf %167, %168 : vector<8x32xf32>
    %c0_84 = arith.constant 0 : index
    %c0_85 = arith.constant 0 : index
    %170 = vector.load %arg27[%c0_84, %c0_85] : memref<8x32xf32, #tpu.memory_space<vmem>>, vector<8x32xf32>
    tpu.vector_store %arg27[%c0_84, %c0_85], %169 {strides = array<i32>} : memref<8x32xf32, #tpu.memory_space<vmem>>, vector<8x32xf32>,
    %c1_i32 = arith.constant 1 : i32
    %171 = arith.cmpi eq, %arg1, %c1_i32 : i32
    %172 = arith.extui %171 : i1 to i32
    %c0_i32_86 = arith.constant 0 : i32
    %173 = arith.cmpi ne, %172, %c0_i32_86 : i32
    scf.if %173 {
      %174 = vector.extract_strided_slice %169 {offsets = [0, 0], sizes = [1, 32], strides = [1, 1]} : vector<8x32xf32> to vector<1x32xf32>
      %175 = arith.truncf %174 : vector<1x32xf32> to vector<1x32xbf16>
      %c0_87 = arith.constant 0 : index
      %c0_88 = arith.constant 0 : index
      %176 = vector.load %arg22[%c0_87, %c0_88] : memref<32x32xbf16, #tpu.memory_space<vmem>>, vector<32x32xbf16>
      %cst_89 = arith.constant dense<0.000000e+00> : vector<1x32xf32>
      %177 = tpu.matmul %175, %176, %cst_89 {dimension_numbers = #tpu.dot_dimension_numbers<[1], [0], [0], [1], [0, 0, 1, 1], [], []>} : vector<1x32xbf16>, vector<32x32xbf16>, vector<1x32xf32> -> vector<1x32xf32>
      %c0_90 = arith.constant 0 : index
      %c0_91 = arith.constant 0 : index
      %178 = vector.load %arg23[%c0_90, %c0_91] : memref<1x32xf32, #tpu.memory_space<vmem>>, vector<1x32xf32>
      %179 = arith.addf %177, %178 : vector<1x32xf32>
      %180 = math.tanh %179 : vector<1x32xf32>
      %181 = arith.truncf %180 : vector<1x32xf32> to vector<1x32xbf16>
      %c0_92 = arith.constant 0 : index
      %c0_93 = arith.constant 0 : index
      %182 = vector.load %arg24[%c0_92, %c0_93] : memref<32x128xbf16, #tpu.memory_space<vmem>>, vector<32x128xbf16>
      %cst_94 = arith.constant dense<0.000000e+00> : vector<1x128xf32>
      %183 = tpu.matmul %181, %182, %cst_94 {dimension_numbers = #tpu.dot_dimension_numbers<[1], [0], [0], [1], [0, 0, 1, 1], [], []>} : vector<1x32xbf16>, vector<32x128xbf16>, vector<1x128xf32> -> vector<1x128xf32>
      %c0_95 = arith.constant 0 : index
      %c0_96 = arith.constant 0 : index
      %184 = vector.load %arg25[%c0_95, %c0_96] : memref<1x128xf32, #tpu.memory_space<vmem>>, vector<1x128xf32>
      %185 = arith.addf %183, %184 : vector<1x128xf32>
      %c0_97 = arith.constant 0 : index
      %c0_98 = arith.constant 0 : index
      %c0_99 = arith.constant 0 : index
      %186 = vector.load %arg26[%c0_97, %c0_98, %c0_99] : memref<1x1x128xf32, #tpu.memory_space<vmem>>, vector<1x1x128xf32>
      %187 = vector.shape_cast %186 : vector<1x1x128xf32> to vector<1x128xf32>
      %188 = vector.shape_cast %185 : vector<1x128xf32> to vector<1x1x128xf32>
      tpu.vector_store %arg26[%c0_97, %c0_98, %c0_99], %188 {strides = array<i32>} : memref<1x1x128xf32, #tpu.memory_space<vmem>>, vector<1x1x128xf32>,
    } else {
    }
    return
  }
  func.func @transform_0(%arg0: i32, %arg1: i32) -> (i32, i32, i32) {
    %c0_i32 = arith.constant 0 : i32
    %c0_i32_0 = arith.constant 0 : i32
    %c0_i32_1 = arith.constant 0 : i32
    return %arg0, %c0_i32, %c0_i32_0 : i32, i32, i32
  }
  func.func @transform_1(%arg0: i32, %arg1: i32) -> (i32, i32, i32) {
    %c0_i32 = arith.constant 0 : i32
    %c0_i32_0 = arith.constant 0 : i32
    %c0_i32_1 = arith.constant 0 : i32
    return %arg0, %c0_i32, %c0_i32_0 : i32, i32, i32
  }
  func.func @transform_2(%arg0: i32, %arg1: i32) -> (i32, i32) {
    %c0_i32 = arith.constant 0 : i32
    %c0_i32_0 = arith.constant 0 : i32
    %c0_i32_1 = arith.constant 0 : i32
    return %c0_i32, %c0_i32_0 : i32, i32
  }
  func.func @transform_3(%arg0: i32, %arg1: i32) -> (i32, i32) {
    %c0_i32 = arith.constant 0 : i32
    %c0_i32_0 = arith.constant 0 : i32
    %c0_i32_1 = arith.constant 0 : i32
    return %c0_i32, %c0_i32_0 : i32, i32
  }
  func.func @transform_4(%arg0: i32, %arg1: i32) -> (i32, i32, i32) {
    %c0_i32 = arith.constant 0 : i32
    %c0_i32_0 = arith.constant 0 : i32
    %c0_i32_1 = arith.constant 0 : i32
    return %arg1, %c0_i32, %c0_i32_0 : i32, i32, i32
  }
  func.func @transform_5(%arg0: i32, %arg1: i32) -> (i32, i32, i32) {
    %c0_i32 = arith.constant 0 : i32
    %c0_i32_0 = arith.constant 0 : i32
    %c0_i32_1 = arith.constant 0 : i32
    return %arg1, %c0_i32, %c0_i32_0 : i32, i32, i32
  }
  func.func @transform_6(%arg0: i32, %arg1: i32) -> (i32, i32, i32) {
    %c0_i32 = arith.constant 0 : i32
    %c0_i32_0 = arith.constant 0 : i32
    %c0_i32_1 = arith.constant 0 : i32
    return %arg1, %c0_i32, %c0_i32_0 : i32, i32, i32
  }
  func.func @transform_7(%arg0: i32, %arg1: i32) -> (i32, i32, i32) {
    %c0_i32 = arith.constant 0 : i32
    %c0_i32_0 = arith.constant 0 : i32
    %c0_i32_1 = arith.constant 0 : i32
    return %arg1, %c0_i32, %c0_i32_0 : i32, i32, i32
  }
  func.func @transform_8(%arg0: i32, %arg1: i32) -> (i32, i32, i32) {
    %c0_i32 = arith.constant 0 : i32
    %c0_i32_0 = arith.constant 0 : i32
    %c0_i32_1 = arith.constant 0 : i32
    return %arg1, %c0_i32, %c0_i32_0 : i32, i32, i32
  }
  func.func @transform_9(%arg0: i32, %arg1: i32) -> (i32, i32, i32) {
    %c0_i32 = arith.constant 0 : i32
    %c0_i32_0 = arith.constant 0 : i32
    %c0_i32_1 = arith.constant 0 : i32
    return %arg1, %c0_i32, %c0_i32_0 : i32, i32, i32
  }
  func.func @transform_10(%arg0: i32, %arg1: i32) -> (i32, i32, i32) {
    %c0_i32 = arith.constant 0 : i32
    %c0_i32_0 = arith.constant 0 : i32
    %c0_i32_1 = arith.constant 0 : i32
    return %arg1, %c0_i32, %c0_i32_0 : i32, i32, i32
  }
  func.func @transform_11(%arg0: i32, %arg1: i32) -> (i32, i32, i32) {
    %c0_i32 = arith.constant 0 : i32
    %c0_i32_0 = arith.constant 0 : i32
    %c0_i32_1 = arith.constant 0 : i32
    return %arg1, %c0_i32, %c0_i32_0 : i32, i32, i32
  }
  func.func @transform_12(%arg0: i32, %arg1: i32) -> (i32, i32, i32) {
    %c0_i32 = arith.constant 0 : i32
    %c0_i32_0 = arith.constant 0 : i32
    %c0_i32_1 = arith.constant 0 : i32
    return %arg1, %c0_i32, %c0_i32_0 : i32, i32, i32
  }
  func.func @transform_13(%arg0: i32, %arg1: i32) -> (i32, i32, i32) {
    %c0_i32 = arith.constant 0 : i32
    %c0_i32_0 = arith.constant 0 : i32
    %c0_i32_1 = arith.constant 0 : i32
    return %arg1, %c0_i32, %c0_i32_0 : i32, i32, i32
  }
  func.func @transform_14(%arg0: i32, %arg1: i32) -> (i32, i32, i32) {
    %c0_i32 = arith.constant 0 : i32
    %c0_i32_0 = arith.constant 0 : i32
    %c0_i32_1 = arith.constant 0 : i32
    return %arg1, %c0_i32, %c0_i32_0 : i32, i32, i32
  }
  func.func @transform_15(%arg0: i32, %arg1: i32) -> (i32, i32, i32) {
    %c0_i32 = arith.constant 0 : i32
    %c0_i32_0 = arith.constant 0 : i32
    %c0_i32_1 = arith.constant 0 : i32
    return %arg1, %c0_i32, %c0_i32_0 : i32, i32, i32
  }
  func.func @transform_16(%arg0: i32, %arg1: i32) -> (i32, i32, i32) {
    %c0_i32 = arith.constant 0 : i32
    %c0_i32_0 = arith.constant 0 : i32
    %c0_i32_1 = arith.constant 0 : i32
    return %arg1, %c0_i32, %c0_i32_0 : i32, i32, i32
  }
  func.func @transform_17(%arg0: i32, %arg1: i32) -> (i32, i32, i32) {
    %c0_i32 = arith.constant 0 : i32
    %c0_i32_0 = arith.constant 0 : i32
    %c0_i32_1 = arith.constant 0 : i32
    return %arg1, %c0_i32, %c0_i32_0 : i32, i32, i32
  }
  func.func @transform_18(%arg0: i32, %arg1: i32) -> (i32, i32, i32) {
    %c0_i32 = arith.constant 0 : i32
    %c0_i32_0 = arith.constant 0 : i32
    %c0_i32_1 = arith.constant 0 : i32
    return %arg1, %c0_i32, %c0_i32_0 : i32, i32, i32
  }
  func.func @transform_19(%arg0: i32, %arg1: i32) -> (i32, i32, i32) {
    %c0_i32 = arith.constant 0 : i32
    %c0_i32_0 = arith.constant 0 : i32
    %c0_i32_1 = arith.constant 0 : i32
    return %arg1, %c0_i32, %c0_i32_0 : i32, i32, i32
  }
  func.func @transform_20(%arg0: i32, %arg1: i32) -> (i32, i32) {
    %c0_i32 = arith.constant 0 : i32
    %c0_i32_0 = arith.constant 0 : i32
    %c0_i32_1 = arith.constant 0 : i32
    return %c0_i32, %c0_i32_0 : i32, i32
  }
  func.func @transform_21(%arg0: i32, %arg1: i32) -> (i32, i32) {
    %c0_i32 = arith.constant 0 : i32
    %c0_i32_0 = arith.constant 0 : i32
    %c0_i32_1 = arith.constant 0 : i32
    return %c0_i32, %c0_i32_0 : i32, i32
  }
  func.func @transform_22(%arg0: i32, %arg1: i32) -> (i32, i32) {
    %c0_i32 = arith.constant 0 : i32
    %c0_i32_0 = arith.constant 0 : i32
    %c0_i32_1 = arith.constant 0 : i32
    return %c0_i32, %c0_i32_0 : i32, i32
  }
  func.func @transform_23(%arg0: i32, %arg1: i32) -> (i32, i32) {
    %c0_i32 = arith.constant 0 : i32
    %c0_i32_0 = arith.constant 0 : i32
    %c0_i32_1 = arith.constant 0 : i32
    return %c0_i32, %c0_i32_0 : i32, i32
  }
  func.func @transform_24(%arg0: i32, %arg1: i32) -> (i32, i32, i32) {
    %c0_i32 = arith.constant 0 : i32
    %c0_i32_0 = arith.constant 0 : i32
    %c0_i32_1 = arith.constant 0 : i32
    return %arg0, %c0_i32, %c0_i32_0 : i32, i32, i32
  }
}

</mosaic_0001>

<bundles_post_ra>
// kernel: tpu_custom_call.1
= control target key start
LH: loop header
LB: loop body
LE: loop exit
PB: predicated region body
PF: predicated region fallthrough
CT: control target
= control target key end

     0   :  { %s2875_s0 = inlined_call_operand.vmem [shape: f32[2,8,32], index: 0, kind: input, shape index: {}]   ;;  %s2876_s1 = inlined_call_operand.vmem [shape: f32[2,1,8], index: 1, kind: input, shape index: {}]   ;;  %s2877_s2 = inlined_call_operand.vmem [shape: f32[1,32], index: 2, kind: input, shape index: {}]   ;;  %s2878_s3 = inlined_call_operand.vmem [shape: f32[1,32], index: 3, kind: input, shape index: {}]   ;;  %s2879_s4 = inlined_call_operand.vmem [shape: bf16[2,32,32], index: 4, kind: input, shape index: {}]   ;;  %s2880_s5 = inlined_call_operand.vmem [shape: f32[2,32,1], index: 5, kind: input, shape index: {}]   ;;  %s2881_s6 = inlined_call_operand.vmem [shape: bf16[2,32,32], index: 6, kind: input, shape index: {}]   ;;  %s2882_s7 = inlined_call_operand.vmem [shape: f32[2,32,1], index: 7, kind: input, shape index: {}]   ;;  %s2883_s8 = inlined_call_operand.vmem [shape: bf16[2,32,32], index: 8, kind: input, shape index: {}]   ;;  %s2884_s9 = inlined_call_operand.vmem [shape: f32[2,32,1], index: 9, kind: input, shape index: {}]   ;;  %s2885_s10 = inlined_call_operand.vmem [shape: bf16[2,32,32], index: 10, kind: input, shape index: {}]   ;;  %s2886_s11 = inlined_call_operand.vmem [shape: f32[2,1,32], index: 11, kind: input, shape index: {}]   ;;  %s2887_s12 = inlined_call_operand.vmem [shape: f32[2,1,32], index: 12, kind: input, shape index: {}]   ;;  %s2888_s13 = inlined_call_operand.vmem [shape: f32[2,1,32], index: 13, kind: input, shape index: {}]   ;;  %s2889_s14 = inlined_call_operand.vmem [shape: bf16[2,32,64], index: 14, kind: input, shape index: {}]   ;;  %s2890_s15 = inlined_call_operand.vmem [shape: f32[2,1,64], index: 15, kind: input, shape index: {}]   ;;  %s2891_s16 = inlined_call_operand.vmem [shape: bf16[2,64,32], index: 16, kind: input, shape index: {}]   ;;  %s2892_s17 = inlined_call_operand.vmem [shape: f32[2,1,32], index: 17, kind: input, shape index: {}]   ;;  %s2893_s18 = inlined_call_operand.vmem [shape: f32[2,1,32], index: 18, kind: input, shape index: {}]   ;;  %s2894_s19 = inlined_call_operand.vmem [shape: f32[2,1,32], index: 19, kind: input, shape index: {}]   ;;  %s2895_s20 = inlined_call_operand.vmem [shape: bf16[32,32], index: 20, kind: input, shape index: {}]   ;;  %s2896_s21 = inlined_call_operand.vmem [shape: f32[1,32], index: 21, kind: input, shape index: {}]   ;;  %s2897_s22 = inlined_call_operand.vmem [shape: bf16[32,128], index: 22, kind: input, shape index: {}]   ;;  %s2898_s23 = inlined_call_operand.vmem [shape: f32[1,128], index: 23, kind: input, shape index: {}]   ;;  %s2899_s24 = inlined_call_operand.hbm [shape: f32[2,1,128], index: 24, kind: output, shape index: {}]  }
   0x1   :  { %2920 = sst [smem:[#allocation23_spill]] %s2875_s0 }
   0x2   :  { %2921 = sst [smem:[#allocation24_spill]] %s2876_s1 }
   0x3   :  { %2922 = sst [smem:[#allocation25_spill]] %s2877_s2 }
   0x4   :  { %2923 = sst [smem:[#allocation26_spill]] %s2878_s3 }
   0x5   :  { %2924 = sst [smem:[#allocation27_spill]] %s2879_s4 }
   0x6   :  { %2925 = sst [smem:[#allocation28_spill]] %s2880_s5 }
   0x7   :  { %2926 = sst [smem:[#allocation29_spill]] %s2881_s6 }
   0x8   :  { %2927 = sst [smem:[#allocation30_spill]] %s2882_s7 }
   0x9   :  { %2928 = sst [smem:[#allocation31_spill]] %s2883_s8 }
   0xa   :  { %2929 = sst [smem:[#allocation32_spill]] %s2884_s9 }
   0xb   :  { %2930 = sst [smem:[#allocation33_spill]] %s2885_s10 }
   0xc   :  { %2931 = sst [smem:[#allocation34_spill]] %s2888_s13 }
   0xd   :  { %2932 = sst [smem:[#allocation35_spill]] %s2889_s14 }
   0xe   :  { %2933 = sst [smem:[#allocation36_spill]] %s2893_s18 }
   0xf   :  { %2934 = sst [smem:[#allocation37_spill]] %s2894_s19 }
  0x10   :  { %2935 = sst [smem:[#allocation38_spill]] %s2895_s20 }
  0x11   :  { %2936 = sst [smem:[#allocation39_spill]] %s2896_s21 }
  0x12   :  { %2937 = sst [smem:[#allocation40_spill]] %s2897_s22 }
  0x13   :  { %2938 = sst [smem:[#allocation41_spill]] %s2898_s23 }
  0x14   :  { %2939 = sst [smem:[#allocation42_spill]] %s2899_s24 }
  0x15   :  { %29 = vsyncpa [#allocation4], 0 }
  0x16   :  { %31 = vsyncpa [#allocation4 + $0x1], 0  ;;  %s2529_s5 = smov 0   ;;  %s2531_s26 = smov 0  }
  0x17   :  { %s2533_s27 = smov 0   ;;  %s2535_s28 = smov 0  }
  0x18   :  { %s2537_s6 = smov 0   ;;  %s2539_s2 = smov 0  }
  0x19   :  { %s2541_s29 = smov 0   ;;  %s2543_s0 = smov 0  }
  0x1a LB: > { %2940 = sst [smem:[#allocation6_spill]] %s2371_s5  ;;  %s2052_s7 = sadd.s32 4294967295, %s2399_s0   ;;  %s2399_s0 = sphi %s2543_s0, %s37_s0   ;;  %s2395_s29 = sphi %s2541_s29, %s3007_s29   ;;  %s2391_s2 = sphi %s2539_s2, %s3006_s2   ;;  %s2387_s6 = sphi %s2537_s6, %s3005_s6   ;;  %s2383_s28 = sphi %s2535_s28, %s3004_s28   ;;  %s2379_s27 = sphi %s2533_s27, %s3003_s27   ;;  %s2375_s26 = sphi %s2531_s26, %s3009_s26   ;;  %s2371_s5 = sphi %s2529_s5, %s3008_s5  }
  0x1b   : > { %2941 = sst [smem:[#allocation7_spill]] %s2379_s27  ;;  %s2053_s30 = sadd.s32 4294967294, %s2399_s0  }
  0x1c   : > { %2942 = sst [smem:[#allocation8_spill]] %s2383_s28  ;;  %s46_s3 = sadd.s32 1, %s2391_s2 }
  0x1d   : > { %2943 = sst [smem:[#allocation9_spill]] %s2387_s6  ;;  %p47_p0 = scmp.ge.s32.totalorder %s46_s3, 2 }
  0x1e   : > { %2944 = sst [smem:[#allocation10_spill]] %s2391_s2  ;;  %s49_s25 = sadd.s32 1, %s2395_s29 }
  0x1f   : > { %2945 = sst [smem:[#allocation11_spill]] %s2395_s29  ;;  %p660_p1 = scmp.ne.s32.totalorder %s2379_s27, %s2375_s26 }
  0x20   : > { %2946 = sst [smem:[#allocation12_spill]] %s2399_s0  ;;  %p661_p2 = scmp.eq.s32.totalorder %s2052_s7, 3 }
  0x21   : > { %s3011_s3 = smov (%p47_p0, %s46_s3), 0  ;;  %s3013_s25 = smov (!%p47_p0, %s49_s25), %s2395_s29 }
  0x22   : > { %2947 = sst [smem:[#allocation13_spill]] %s3011_s3  ;;  %p2578_p3 = por %p661_p2, %p660_p1 }
  0x23   : > { %p666_p4 = scmp.ne.s32.totalorder %s2375_s26, %s2371_s5  ;;  %p51_p5 = scmp.ge.s32.totalorder %s3013_s25, 2 }
  0x24   : > { %s2948_s8 = scalar_select %p2578_p3, 1, 0 }
  0x25   : > { %p667_p6 = scmp.eq.s32.totalorder %s2053_s30, 3  ;;  %p2056_p7 = scmp.ge.s32.totalorder %s2399_s0, 1 }
  0x26   : > { %2949 = sst [smem:[#allocation14_spill]] %s2948_s8  ;;  %p830_p8 = scmp.lt.s32.totalorder %s2399_s0, 5 }
  0x27   : > { %s3015_s25 = smov (%p51_p5, %s3013_s25), 0  ;;  %p2588_p9 = por %p667_p6, %p666_p4 }
  0x28   : > { %2950 = sst [smem:[#allocation15_spill]] %s3015_s25  ;;  %p831_p10 = pnand %p2056_p7, %p830_p8 }
  0x29   : > { %s2951_s4 = scalar_select %p2588_p9, 1, 0 }
  0x2a   : > { %s647_s1 = ssub.s32 %s2395_s29, %s3015_s25  ;;  %s650_s7 = sadd.s32 1, %s2379_s27 }
  0x2b   : > { %2952 = sst [smem:[#allocation16_spill]] %s2951_s4  ;;  %p648_p11 = scmp.eq.s32.totalorder %s647_s1, 0 }
  0x2c   : > { %834 = sbr.rel (%p831_p10) target bundleno = 3098 (0xc1a), region = 116 }
  0x2d   : > { %s2596_s3 = scalar_select %p648_p11, %s2379_s27, %s650_s7  }
  0x2f   : > { %2953 = sst [smem:[#allocation17_spill]] %s2596_s3 }
  0x31   : > { %p963_p12 = scmp.lt.s32.totalorder %s2387_s6, 1  ;;  %p970_p13 = scmp.lt.s32.totalorder %s2383_s28, 1 }
  0x32   : > { %s2956_s5 = sld [smem:[#allocation23_spill]]  ;;  %s2972_s13 = sand.u32 1, %s2375_s26  }
  0x33   : > { %s2602_s2 = scalar_select %p963_p12, %s2387_s6, 1 }
  0x34   : > { %s2605_s4 = scalar_select %p970_p13, %s2383_s28, 1 }
  0x35   : > { %2954 = sst [smem:[#allocation18_spill]] %s2602_s2  ;;  %s2057_s1 = sshll.u32 %s2602_s2, 3 }
  0x36   : > { %s2168_s8 = sshll.u32 %s2605_s4, 4  ;;  %s2957_s23 = sld [smem:[#allocation27_spill]] }
  0x37   : > { %s2169_s22 = sshll.u32 %s2605_s4, 5  ;;  %s2959_s19 = sld [smem:[#allocation28_spill]] }
  0x38   : > { %s966_s0 = scalar_lea.vmem %s2956_s5, %s2057_s1  ;;  %s2961_s27 = sld [smem:[#allocation29_spill]] }
  0x39   : > { %s2962_s3 = sld [smem:[#allocation30_spill]] }
  0x3a   : > { %s2963_s2 = sld [smem:[#allocation31_spill]] }
  0x3b   : > { %s2965_s9 = sld [smem:[#allocation32_spill]] }
  0x3c   : > { %s2619_s21 = scalar_lea.vmem %s2957_s23, %s2168_s8  ;;  %s2966_s10 = sld [smem:[#allocation33_spill]] }
  0x3d   : > { %2958 = sst [smem:[#allocation19_spill]] %s2619_s21  ;;  %s2625_s25 = scalar_lea.vmem %s2959_s19, %s2169_s22 }
  0x3e   : > { %2960 = sst [smem:[#allocation20_spill]] %s2625_s25  ;;  %s2630_s5 = scalar_lea.vmem %s2961_s27, %s2168_s8 }
  0x3f   : > { %s2635_s24 = scalar_lea.vmem %s2962_s3, %s2169_s22  ;;  %s2969_s14 = sld [smem:[#allocation35_spill]] }
  0x40   : > { %s2640_s21 = scalar_lea.vmem %s2963_s2, %s2168_s8  ;;  %s2676_s27 = scalar_lea.vmem %s2891_s16, %s2169_s22 }
  0x41   : > { %2964 = sst [smem:[#allocation21_spill]] %s2640_s21  ;;  %s2645_s19 = scalar_lea.vmem %s2965_s9, %s2169_s22 }
  0x42   : > { %s2650_s29 = scalar_lea.vmem %s2966_s10, %s2168_s8  ;;  %s1021_s10 = scalar_lea.vmem %s2890_s15, %s2605_s4 }
  0x43   : > { %2967 = sst [smem:[#allocation22_spill]] %s2650_s29  ;;  %s1029_s23 = scalar_lea.vmem %s2892_s17, %s2605_s4 }
  0x44   : > { %s2970_s21 = sld [smem:[#allocation36_spill]]  ;;  %s2692_s25 = scalar_lea.vmem [#allocation3], %s2972_s13 }
  0x45   : > { %s2667_s9 = scalar_lea.vmem %s2969_s14, %s2168_s8  ;;  %s2971_s20 = sld [smem:[#allocation37_spill]] }
  0x46   : > { %s2973_s28 = sld [smem:[#allocation8_spill]] }
  0x4a   : > { %s1032_s3 = scalar_lea.vmem %s2970_s21, %s2605_s4 }
  0x4b   : > { %s1035_s14 = scalar_lea.vmem %s2971_s20, %s2605_s4 }
  0x4c   : > { %p2076_p0 = scmp.ne.s32.totalorder %s2973_s28, 0 }
  0x4d   : > { %s2974_s22 = sld [smem:[#allocation25_spill]] (!%p2076_p0) }
  0x4e   : > { %1040 = sbr.rel (%p2076_p0) target bundleno = 353 (0x161), region = 120  ;;  %s2975_s7 = sld [smem:[#allocation26_spill]] (!%p2076_p0) }
  0x53   : > { %v1041_v0 = vld [vmem:[%s966_s0] sm:$0xff]  ;;  %vm1044_vm0 = vcmask 261120   ;;  %v2401_v2 = vmov 32.0  }
  0x54   : > { %v1045_v1 = vsel %vm1044_vm0, %v1041_v0, 0.0  ;;  %2272 = vrcp.f32 %v2401_v2  ;;  %v2270_v23 = vld [vmem:[%s2974_s22] ss:$0 sm:$0xff] }
  0x55   : > { %1046 = vadd.xlane.f32.xlu0 %v1045_v1  ;;  %v2271_v25 = vld [vmem:[%s2975_s7] ss:$0 sm:$0xff] }
  0x5a   : > { %v2273_v3 = vpop.eup %2272 }
  0x5b   : > { %v1049_v4 = vmul.f32 32.0, %v2273_v3  ;;  %vm1053_vm1 = vweird.f32 %v2273_v3 }
  0x5d   : > { %v1050_v5 = vsub.f32 1.0, %v1049_v4 }
  0x5f   : > { %v1051_v6 = vmul.f32 %v2273_v3, %v1050_v5 }
  0x61   : > { %v1052_v7 = vadd.f32 %v2273_v3, %v1051_v6 }
  0x63   : > { %v1054_v8 = vsel %vm1053_vm1, %v2273_v3, %v1052_v7 }
  0xc8   : > { %v1047_v9 = vpop.xlane.xlu0 %1046 }
  0xc9   : > { %v1055_v10 = vmul.f32 %v1054_v8, %v1047_v9 }
  0xcb   : > { %v1056_v11 = vsub.f32 %v1041_v0, %v1055_v10 }
  0xcd   : > { %v1057_v12 = vmul.f32 %v1056_v11, %v1056_v11 }
  0xcf   : > { %v1058_v13 = vsel %vm1044_vm0, %v1057_v12, 0.0 }
  0xd0   : > { %1059 = vadd.xlane.f32.xlu0 %v1058_v13 }
 0x143   : > { %v1060_v14 = vpop.xlane.xlu0 %1059 }
 0x144   : > { %v1061_v15 = vmul.f32 %v1060_v14, %v1054_v8 }
 0x146   : > { %v1062_v16 = vadd.f32 1e-12, %v1061_v15 }
 0x148   : > { %2274 = vrsqrt.f32 %v1062_v16  ;;  %vm1069_vm3 = vweird.f32 %v1062_v16 }
 0x14e   : > { %v2275_v17 = vpop.eup %2274 }
 0x14f   : > { %v1064_v18 = vmul.f32 %v2275_v17, %v1062_v16  ;;  %vm1070_vm2 = vweird.f32 %v2275_v17 }
 0x150   : > { %vm1071_vm4 = vmor %vm1069_vm3, %vm1070_vm2 }
 0x151   : > { %v1065_v19 = vmul.f32 %v2275_v17, %v1064_v18 }
 0x153   : > { %v1066_v20 = vmul.f32 0.5, %v1065_v19 }
 0x155   : > { %v1067_v21 = vsub.f32 1.5, %v1066_v20 }
 0x157   : > { %v1068_v22 = vmul.f32 %v2275_v17, %v1067_v21 }
 0x159   : > { %v1072_v24 = vsel %vm1071_vm4, %v2275_v17, %v1068_v22 }
 0x15a   : > { %v1073_v26 = vmul.f32 %v1072_v24, %v1056_v11 }
 0x15c   : > { %v1077_v27 = vmul.f32 %v2270_v23, %v1073_v26 }
 0x15e   : > { %v1081_v28 = vadd.f32 %v2271_v25, %v1077_v27 }
 0x160   : > { %1082 = vst.msk [vmem:[#allocation2] sm:$0xff] %vm1044_vm0, %v1081_v28 }
 0x161 PF: > { %s2976_s30 = sld [smem:[#allocation20_spill]]  ;;  %v2402_v31 = vmov 0   ;;  %v1187_v33 = vld [vmem:[%s2635_s24] sm:$0xff]  ;;  %v1251_v36 = vld [vmem:[%s2645_s19 + $0x8] sm:$0xff]  ;;  %v1190_v38 = vld [vmem:[%s2635_s24 + $0x18] sm:$0xff]  ;;  %vm1157_vm5 = vcmask 261120   ;;  %s2983_s13 = scalar_lea.vmem %s2886_s11, %s2605_s4 }
 0x162   : > { %2277 = vset.pattern.permute.xlu1 %v2402_v31  ;;  %2278 = vset.pattern.permute.xlu2 %v2402_v31  ;;  %s2977_s1 = sld [smem:[#allocation19_spill]]  ;;  %v1188_v39 = vld [vmem:[%s2635_s24 + $0x8] sm:$0xff]  ;;  %v2179_v45 = vld [vmem:[%s2630_s5] sm:$0xff]  ;;  %vm1353_vm6 = vcmask 130048   ;;  %vm1375_vm7 = vcmask 64512   ;;  %s2984_s22 = scalar_lea.vmem %s2887_s12, %s2605_s4  ;;  %vm1668_vm12 = vcmask 523264  }
 0x163   : > { %s2978_s2 = sld [smem:[#allocation21_spill]]  ;;  %1198 = vperm.xlu2 %2278, %v1188_v39   ;;  %v2180_v48 = vld [vmem:[%s2630_s5 + $0x8] sm:$0xff]  ;;  %v1250_v7 = vld [vmem:[%s2645_s19] sm:$0xff] }
 0x164   : > { %s2979_s5 = sld [smem:[#allocation18_spill]] }
 0x165   : > { %s2980_s8 = sld [smem:[#allocation24_spill]] }
 0x166   : > { %s2985_s7 = sld [smem:[#allocation34_spill]] }
 0x167   : > { %v2704_v29 = vld [vmem:[#allocation2] sm:$0xff]  ;;  %v1124_v30 = vld [vmem:[%s2976_s30 + $0x8] sm:$0xff]  ;;  %v1125_v40 = vld [vmem:[%s2976_s30 + $0x10] sm:$0xff] }
 0x168   : > { %1085 = vxpose.xlu0.b32.start.end [1/1] (short) (narrow) %v2704_v29, 32  ;;  %1134 = vperm.xlu1 %2277, %v1124_v30   ;;  %v1123_v34 = vld [vmem:[%s2976_s30] sm:$0xff]  ;;  %v2178_v47 = vld [vmem:[%s2977_s1 + $0x8] sm:$0xff]  ;;  %v1126_v27 = vld [vmem:[%s2976_s30 + $0x18] sm:$0xff] }
 0x169   : > { %v2177_v44 = vld [vmem:[%s2977_s1] sm:$0xff]  ;;  %v2182_v30 = vld [vmem:[%s2978_s2 + $0x8] sm:$0xff] }
 0x16a   : > { %v2181_v46 = vld [vmem:[%s2978_s2] sm:$0xff] }
 0x16b   : > { %s2981_s20 = scalar_lea.vmem %s2980_s8, %s2979_s5 }
 0x16c   : > { %v2732_v21 = vld [vmem:[%s2981_s20] ss:$0 sm:$0xff]  ;;  %s2986_s30 = scalar_lea.vmem %s2985_s7, %s2605_s4 }
 0x170   : > { %1193 = vperm.xlu1 %2277, %v1187_v33  }
 0x178   : > { %1261 = vperm.xlu1 %2277, %v1251_v36  }
 0x180   : > { %1139 = vperm.xlu1 %2277, %v1125_v40  }
 0x1bd   : > { %v1199_v56 = vpop.permute.xlu2 %1198 }
 0x1cf   : > { %2276 = vset.pattern.permute.xlu0 %v2402_v31 }
 0x1da   : > { %v1135_v49 = vpop.permute.xlu1 %1134 }
 0x1e2   : > { %v1194_v52 = vpop.permute.xlu1 %1193 }
 0x1ea   : > { %v1262_v11 = vpop.permute.xlu1 %1261 }
 0x1ee   : > { %1129 = vperm.xlu0 %2276, %v1123_v34  }
 0x1f2   : > { %v1140_v28 = vpop.permute.xlu1 %1139 }
 0x1f6   : > { %1208 = vperm.xlu0 %2276, %v1190_v38  }
 0x20c   : > { %v1101_v32 = vpop.trf.xlu0 }
 0x214   : > { %v1102_v35 = vpop.trf.xlu0 }
 0x215   : > { %v1117_v43 = vpack.c.bf16 %v1102_v35, %v1101_v32 }
 0x21c   : > { %v1103_v37 = vpop.trf.xlu0 }
 0x224   : > { %v1104_v41 = vpop.trf.xlu0 }
 0x225   : > { %v1118_v42 = vpack.c.bf16 %v1104_v41, %v1103_v37 }
 0x227   : > { %1170 = vmatpush.bf16.msra.mxu0 %v1118_v42  ;;  %1233 = vmatpush.bf16.msra.mxu1 %v1118_v42 }
 0x228   : > { %1296 = vmatpush.bf16.msra.mxu2 %v1118_v42 }
 0x22b   : > { %1171 = vmatpush.bf16.msra.mxu0 %v1117_v43  ;;  %1234 = vmatpush.bf16.msra.mxu1 %v1117_v43 }
 0x22c   : > { %1297 = vmatpush.bf16.msra.mxu2 %v1117_v43 }
 0x22e   : > { %2085 = vmatmul.msk.bf16.vlgmr.msra.gmra.mxu0 %vm1157_vm5, %v2177_v44  ;;  %2095 = vmatmul.msk.bf16.vlgmr.msra.gmra.mxu1 %vm1157_vm5, %v2179_v45 }
 0x22f   : > { %2105 = vmatmul.msk.bf16.vlgmr.msra.gmra.mxu2 %vm1157_vm5, %v2181_v46  ;;  %v1189_v46 = vld [vmem:[%s2635_s24 + $0x10] sm:$0xff]  ;;  %s2982_s24 = sld [smem:[#allocation22_spill]] }
 0x23e   : > { %2086 = vmatmul.msk.bf16.gmra.mxu0 %vm1157_vm5, %v2178_v47  ;;  %2096 = vmatmul.msk.bf16.gmra.mxu1 %vm1157_vm5, %v2180_v48  ;;  %v1252_v47 = vld [vmem:[%s2645_s19 + $0x10] sm:$0xff]  ;;  %v1253_v48 = vld [vmem:[%s2645_s19 + $0x18] sm:$0xff] }
 0x23f   : > { %2106 = vmatmul.msk.bf16.gmra.mxu2 %vm1157_vm5, %v2182_v30 }
 0x260   : > { %v1130_v53 = vpop.permute.xlu0 %1129 }
 0x2ab   : > { %v1173_v50 = vpop.f32.mrf.mxu0  ;;  %v1236_v51 = vpop.f32.mrf.mxu1 }
 0x2ac   : > { %v1237_v54 = vadd.f32 %v1236_v51, %v1194_v52  ;;  %v1174_v55 = vadd.f32 %v1173_v50, %v1130_v53 }
 0x2ae   : > { %v1313_v57 = vpack.c.bf16 %v1237_v54, %v1237_v54  ;;  %v1309_v60 = vpack.c.bf16 %v1174_v55, %v1174_v55  ;;  %v1209_v55 = vpop.permute.xlu0 %1208 }
 0x2b0   : > { %v1349_v63 = vunpack.c.l.b16 %v1313_v57  ;;  %v1327_v2 = vunpack.c.l.b16 %v1309_v60 }
 0x2b2   : > { %v1299_v9 = vpop.f32.mrf.mxu2 }
 0x2b3   : > { %v1175_v58 = vpop.f32.mrf.mxu0  ;;  %v1238_v59 = vpop.f32.mrf.mxu1 }
 0x2b4   : > { %v1176_v61 = vadd.f32 %v1175_v58, %v1135_v49  ;;  %v1239_v62 = vadd.f32 %v1238_v59, %v1199_v56 }
 0x2b6   : > { %v1310_v0 = vpack.c.bf16 %v1176_v61, %v1176_v61  ;;  %v1314_v1 = vpack.c.bf16 %v1239_v62, %v1239_v62 }
 0x2b8   : > { %v1328_v3 = vunpack.c.l.b16 %v1310_v0  ;;  %v1350_v4 = vunpack.c.l.b16 %v1314_v1 }
 0x2ba   : > { %v1329_v5 = vpack.c.b16 %v1328_v3, %v1327_v2  ;;  %v1351_v6 = vpack.c.b16 %v1350_v4, %v1349_v63  ;;  %v1301_v10 = vpop.f32.mrf.mxu2 }
 0x2bb   : > { %v1302_v12 = vadd.f32 %v1301_v10, %v1262_v11  ;;  %v1178_v36 = vpop.f32.mrf.mxu0  ;;  %v1241_v51 = vpop.f32.mrf.mxu1 }
 0x2bc   : > { %1364 = vmatpush.bf16.msra.mxu3 %v1351_v6  ;;  %1331 = vxpose.xlu2.c.b16.start.end [1/1] (short) (narrow) %v1329_v5, 16  ;;  %v1179_v37 = vadd.f32 %v1178_v36, %v1140_v28 }
 0x2bd   : > { %v1318_v14 = vpack.c.bf16 %v1302_v12, %v1302_v12 }
 0x2be   : > { %v1311_v40 = vpack.c.bf16 %v1179_v37, %v1179_v37 }
 0x2bf   : > { %v1391_v17 = vunpack.c.l.b16 %v1318_v14 }
 0x2c0   : > { %v1415_v43 = vunpack.c.l.b16 %v1311_v40  ;;  %v2280_v40 = vld [vmem:[%s2983_s13] ss:$0 sm:$0xff] }
 0x2c2   : > { %v1304_v61 = vpop.f32.mrf.mxu2 }
 0x2c3   : > { %v1180_v38 = vpop.f32.mrf.mxu0  ;;  %v1243_v54 = vpop.f32.mrf.mxu1 }
 0x2c4   : > { %v1244_v56 = vadd.f32 %v1243_v54, %v1209_v55 }
 0x2c6   : > { %v1316_v58 = vpack.c.bf16 %v1244_v56, %v1244_v56  ;;  %v2186_v56 = vld [vmem:[%s2667_s9 + $0x8] sm:$0xff] }
 0x2c8   : > { %v1438_v62 = vunpack.c.l.b16 %v1316_v58 }
 0x2ca   : > { %v1306_v3 = vpop.f32.mrf.mxu2 }
 0x325   : > { %1256 = vperm.xlu2 %2278, %v1250_v7  }
 0x35d   : > { %v1339_v8 = vpop.trf.xlu2 }
 0x35e   : > { %2107 = vmatmul.msk.bf16.vlgmr.msra.gmra.mxu3 %vm1353_vm6, %v1339_v8 }
 0x37f   : > { %v1257_v13 = vpop.permute.xlu2 %1256 }
 0x380   : > { %v1300_v15 = vadd.f32 %v1299_v9, %v1257_v13  ;;  %v2183_v13 = vld [vmem:[%s2982_s24] sm:$0xff] }
 0x381   : > { %1534 = vmatpush.bf16.msrb.mxu2 %v2183_v13  ;;  %v2187_v13 = vld [vmem:[%s2676_s27] sm:$0xff] }
 0x382   : > { %v1317_v16 = vpack.c.bf16 %v1300_v15, %v1300_v15 }
 0x384   : > { %v1390_v18 = vunpack.c.l.b16 %v1317_v16 }
 0x386   : > { %v1392_v19 = vpack.c.b16 %v1391_v17, %v1390_v18 }
 0x388   : > { %v1397_v20 = vsel %vm1375_vm7, %v1392_v19, 0 }
 0x389   : > { %1406 = vmatpush.bf16.xpose.msrb.mxu3 %v1397_v20 }
 0x3e1   : > { %v1366_v22 = vpop.f32.mrf.mxu3 }
 0x3e2   : > { %v1370_v23 = vmul.f32 0.25, %v1366_v22 }
 0x3e4   : > { %v1374_v24 = vadd.f32 %v2732_v21, %v1370_v23 }
 0x3e6   : > { %v1376_v25 = vsel %vm1375_vm7, %v1374_v24, -inf }
 0x3e7   : > { %1377 = vmax.xlane.f32.xlu1 %v1376_v25 }
 0x3e9   : > { %v1368_v26 = vpop.f32.mrf.mxu3 }
 0x400   : > { %1144 = vperm.xlu1 %2277, %v1126_v27  }
 0x45a   : > { %v1378_v31 = vpop.xlane.xlu1 %1377 }
 0x45b   : > { %v1379_v32 = vsub.f32 %v1374_v24, %v1378_v31  ;;  %v2184_v31 = vld [vmem:[%s2982_s24 + $0x8] sm:$0xff]  ;;  %s2989_s24 = sld [smem:[#allocation8_spill]] }
 0x45c   : > { %1512 = vmatpush.bf16.msrb.mxu1 %v2184_v31 }
 0x45d   : > { %v1380_v33 = vmul.f32 1.442695, %v1379_v32 }
 0x45f   : > { %2287 = vpow2.f32 %v1380_v33 }
 0x461   : > { %p2147_p1 = scmp.ne.s32.totalorder %s2989_s24, 1 }
 0x462   : > { %s2990_s13 = sld [smem:[#allocation38_spill]] (!%p2147_p1) }
 0x465   : > { %v2288_v34 = vpop.eup %2287 }
 0x466   : > { %v1382_v35 = vsel %vm1375_vm7, %v2288_v34, 0.0 }
 0x467   : > { %1383 = vadd.xlane.f32.xlu1 %v1382_v35 }
 0x472   : > { %v1145_v39 = vpop.permute.xlu1 %1144 }
 0x473   : > { %v1181_v41 = vadd.f32 %v1180_v38, %v1145_v39 }
 0x475   : > { %v1312_v42 = vpack.c.bf16 %v1181_v41, %v1181_v41 }
 0x477   : > { %v1416_v44 = vunpack.c.l.b16 %v1312_v42 }
 0x479   : > { %v1417_v45 = vpack.c.b16 %v1416_v44, %v1415_v43 }
 0x47b   : > { %1419 = vxpose.xlu0.c.b16.start.end [1/1] (short) (narrow) %v1417_v45, 16  ;;  %v2403_v45 = vmov 32.0  }
 0x480   : > { %1203 = vperm.xlu1 %2277, %v1189_v46  }
 0x488   : > { %1266 = vperm.xlu1 %2277, %v1252_v47  }
 0x490   : > { %1271 = vperm.xlu1 %2277, %v1253_v48  }
 0x4da   : > { %v1384_v49 = vpop.xlane.xlu1 %1383 }
 0x4db   : > { %2289 = vrcp.f32 %v1384_v49 }
 0x4e1   : > { %v2290_v50 = vpop.eup %2289 }
 0x4e2   : > { %v1386_v52 = vmul.f32 %v2290_v50, %v2288_v34 }
 0x4e4   : > { %v1387_v53 = vpack.c.bf16 %v1386_v52, %v1386_v52 }
 0x4e6   : > { %2108 = vmatmul.msk.bf16.vlgmr.msrb.gmra.mxu3 %vm1375_vm7, %v1387_v53 }
 0x4f2   : > { %v1204_v57 = vpop.permute.xlu1 %1203 }
 0x4f3   : > { %v1242_v59 = vadd.f32 %v1241_v51, %v1204_v57  ;;  %v2185_v57 = vld [vmem:[%s2667_s9] sm:$0xff]  ;;  %s2991_s9 = sld [smem:[#allocation40_spill]] (!%p2147_p1) }
 0x4f5   : > { %v1315_v60 = vpack.c.bf16 %v1242_v59, %v1242_v59 }
 0x4f7   : > { %v1437_v63 = vunpack.c.l.b16 %v1315_v60 }
 0x4f9   : > { %v1439_v0 = vpack.c.b16 %v1438_v62, %v1437_v63 }
 0x4fa   : > { %v1267_v1 = vpop.permute.xlu1 %1266 }
 0x4fb   : > { %1451 = vmatpush.bf16.msra.mxu3 %v1439_v0  ;;  %v1305_v2 = vadd.f32 %v1304_v61, %v1267_v1 }
 0x4fd   : > { %v1319_v5 = vpack.c.bf16 %v1305_v2, %v1305_v2 }
 0x4ff   : > { %v1473_v8 = vunpack.c.l.b16 %v1319_v5  ;;  %1615 = vmatpush.bf16.msrb.mxu3 %v2186_v56  ;;  %v2282_v5 = vld [vmem:[%s2986_s30] ss:$0 sm:$0xff]  ;;  %s2992_s30 = sld [smem:[#allocation39_spill]] (!%p2147_p1) }
 0x502   : > { %v1272_v4 = vpop.permute.xlu1 %1271 }
 0x503   : > { %v1307_v6 = vadd.f32 %v1306_v3, %v1272_v4  ;;  %1616 = vmatpush.bf16.msrb.mxu3 %v2185_v57  ;;  %v2281_v3 = vld [vmem:[%s2984_s22] ss:$0 sm:$0xff] }
 0x505   : > { %v1320_v7 = vpack.c.bf16 %v1307_v6, %v1307_v6 }
 0x507   : > { %v1474_v9 = vunpack.c.l.b16 %v1320_v7 }
 0x509   : > { %v1475_v10 = vpack.c.b16 %v1474_v9, %v1473_v8 }
 0x50b   : > { %v1480_v11 = vsel %vm1375_vm7, %v1475_v10, 0  ;;  %v2190_v10 = vld [vmem:[%s2676_s27 + $0x18] sm:$0xff] }
 0x50c   : > { %1489 = vmatpush.bf16.xpose.msrb.mxu0 %v1480_v11  ;;  %v2189_v11 = vld [vmem:[%s2676_s27 + $0x10] sm:$0xff] }
 0x514   : > { %1676 = vmatpush.bf16.msra.mxu0 %v2190_v10 }
 0x518   : > { %1677 = vmatpush.bf16.msra.mxu0 %v2189_v11 }
 0x527   : > { %v1427_v12 = vpop.trf.xlu0 }
 0x528   : > { %2109 = vmatmul.msk.bf16.vlgmr.msra.gmra.mxu3 %vm1353_vm6, %v1427_v12  ;;  %v2188_v12 = vld [vmem:[%s2676_s27 + $0x8] sm:$0xff]  ;;  %s2993_s27 = sld [smem:[#allocation41_spill]] (!%p2147_p1) }
 0x529   : > { %1678 = vmatpush.bf16.msra.mxu0 %v2188_v12 }
 0x52d   : > { %1679 = vmatpush.bf16.msra.mxu0 %v2187_v13 }
 0x569   : > { %v1408_v14 = vpop.f32.mrf.mxu3 }
 0x56a   : > { %v1412_v15 = vpack.c.bf16 %v1408_v14, %v1408_v14  ;;  %v2283_v14 = vld [vmem:[%s1021_s10] ss:$0 sm:$0xff] }
 0x56c   : > { %2120 = vmatmul.msk.bf16.vlgmr.msrb.gmra.mxu2 %vm1353_vm6, %v1412_v15 }
 0x571   : > { %v1410_v16 = vpop.f32.mrf.mxu3 }
 0x5ab   : > { %v1453_v17 = vpop.f32.mrf.mxu3 }
 0x5ac   : > { %v1457_v18 = vmul.f32 0.25, %v1453_v17 }
 0x5ae   : > { %v1458_v19 = vadd.f32 %v2732_v21, %v1457_v18 }
 0x5b0   : > { %v1459_v20 = vsel %vm1375_vm7, %v1458_v19, -inf }
 0x5b1   : > { %1460 = vmax.xlane.f32.xlu2 %v1459_v20 }
 0x5b3   : > { %v1455_v22 = vpop.f32.mrf.mxu3 }
 0x5ef   : > { %v1536_v23 = vpop.f32.mrf.mxu2 }
 0x5f7   : > { %v1538_v24 = vpop.f32.mrf.mxu2 }
 0x624   : > { %v1461_v25 = vpop.xlane.xlu2 %1460 }
 0x625   : > { %v1462_v26 = vsub.f32 %v1458_v19, %v1461_v25 }
 0x627   : > { %v1463_v27 = vmul.f32 1.442695, %v1462_v26 }
 0x629   : > { %2291 = vpow2.f32 %v1463_v27 }
 0x62f   : > { %v2292_v28 = vpop.eup %2291 }
 0x630   : > { %v1465_v30 = vsel %vm1375_vm7, %v2292_v28, 0.0 }
 0x631   : > { %1466 = vadd.xlane.f32.xlu1 %v1465_v30  ;;  %v2284_v30 = vld [vmem:[%s1029_s23] ss:$0 sm:$0xff] }
 0x6a4   : > { %v1467_v32 = vpop.xlane.xlu1 %1466 }
 0x6a5   : > { %2293 = vrcp.f32 %v1467_v32 }
 0x6a6   : > { %2295 = vrcp.f32 %v2403_v45 }
 0x6ab   : > { %v2294_v21 = vpop.eup %2293 }
 0x6ac   : > { %v1469_v33 = vmul.f32 %v2294_v21, %v2292_v28  ;;  %v2296_v46 = vpop.eup %2295 }
 0x6ad   : > { %v1552_v47 = vmul.f32 32.0, %v2296_v46  ;;  %vm1556_vm8 = vweird.f32 %v2296_v46 }
 0x6ae   : > { %v1470_v34 = vpack.c.bf16 %v1469_v33, %v1469_v33 }
 0x6af   : > { %v1553_v48 = vsub.f32 1.0, %v1552_v47 }
 0x6b0   : > { %2110 = vmatmul.msk.bf16.vlgmr.msrb.gmra.mxu0 %vm1375_vm7, %v1470_v34 }
 0x6b1   : > { %v1554_v49 = vmul.f32 %v2296_v46, %v1553_v48 }
 0x6b3   : > { %v1555_v50 = vadd.f32 %v2296_v46, %v1554_v49  ;;  %v2285_v49 = vld [vmem:[%s1032_s3] ss:$0 sm:$0xff] }
 0x6b5   : > { %v2761_v51 = vsel %vm1556_vm8, %v2296_v46, %v1555_v50 }
 0x72d   : > { %v1491_v35 = vpop.f32.mrf.mxu0 }
 0x72e   : > { %v1495_v36 = vpack.c.bf16 %v1491_v35, %v1491_v35 }
 0x730   : > { %2115 = vmatmul.msk.bf16.vlgmr.msrb.gmra.mxu1 %vm1353_vm6, %v1495_v36 }
 0x735   : > { %v1493_v37 = vpop.f32.mrf.mxu0 }
 0x7ad   : > { %v1514_v38 = vpop.f32.mrf.mxu1 }
 0x7ae   : > { %v1537_v39 = vadd.f32 %v1536_v23, %v1514_v38 }
 0x7b0   : > { %v1540_v41 = vadd.f32 %v1537_v39, %v2704_v29 }
 0x7b2   : > { %v1545_v42 = vadd.f32 %v2280_v40, %v1540_v41 }
 0x7b4   : > { %v1548_v43 = vsel %vm1157_vm5, %v1545_v42, 0.0 }
 0x7b5   : > { %1549 = vadd.xlane.f32.xlu0 %v1548_v43  ;;  %v1516_v44 = vpop.f32.mrf.mxu1 }
 0x828   : > { %v1550_v52 = vpop.xlane.xlu0 %1549 }
 0x829   : > { %v1558_v29 = vmul.f32 %v2761_v51, %v1550_v52 }
 0x82b   : > { %v1559_v53 = vsub.f32 %v1545_v42, %v1558_v29 }
 0x82d   : > { %v1560_v54 = vmul.f32 %v1559_v53, %v1559_v53 }
 0x82f   : > { %v1561_v55 = vsel %vm1157_vm5, %v1560_v54, 0.0 }
 0x830   : > { %1562 = vadd.xlane.f32.xlu2 %v1561_v55 }
 0x8a3   : > { %v1563_v58 = vpop.xlane.xlu2 %1562 }
 0x8a4   : > { %v1564_v59 = vmul.f32 %v1563_v58, %v2761_v51 }
 0x8a6   : > { %v1565_v60 = vadd.f32 1e-12, %v1564_v59 }
 0x8a8   : > { %2297 = vrsqrt.f32 %v1565_v60  ;;  %vm1572_vm10 = vweird.f32 %v1565_v60 }
 0x8ae   : > { %v2298_v61 = vpop.eup %2297 }
 0x8af   : > { %v1567_v62 = vmul.f32 %v2298_v61, %v1565_v60  ;;  %vm1573_vm9 = vweird.f32 %v2298_v61 }
 0x8b0   : > { %vm1574_vm11 = vmor %vm1572_vm10, %vm1573_vm9 }
 0x8b1   : > { %v1568_v63 = vmul.f32 %v2298_v61, %v1567_v62 }
 0x8b3   : > { %v1569_v0 = vmul.f32 0.5, %v1568_v63 }
 0x8b5   : > { %v1570_v1 = vsub.f32 1.5, %v1569_v0 }
 0x8b7   : > { %v1571_v2 = vmul.f32 %v2298_v61, %v1570_v1 }
 0x8b9   : > { %v1575_v4 = vsel %vm1574_vm11, %v2298_v61, %v1571_v2 }
 0x8ba   : > { %v1576_v6 = vmul.f32 %v1575_v4, %v1559_v53 }
 0x8bc   : > { %v1580_v7 = vmul.f32 %v2281_v3, %v1576_v6 }
 0x8be   : > { %v1584_v8 = vadd.f32 %v2282_v5, %v1580_v7 }
 0x8c0   : > { %v1585_v9 = vpack.c.bf16 %v1584_v8, %v1584_v8 }
 0x8c2   : > { %2129 = vmatmul.msk.bf16.vlgmr.msrb.gmra.mxu3 %vm1157_vm5, %v1585_v9 }
 0x945   : > { %v1618_v15 = vpop.f32.mrf.mxu3 }
 0x946   : > { %v1619_v16 = vadd.f32 %v2283_v14, %v1618_v15 }
 0x948   : > { %v1623_v17 = vmul.f32 0.044715, %v1619_v16  ;;  %v1622_v25 = vmul.f32 0.5, %v1619_v16 }
 0x94a   : > { %v1624_v18 = vmul.f32 %v1623_v17, %v1619_v16 }
 0x94c   : > { %v1625_v19 = vmul.f32 %v1624_v18, %v1619_v16 }
 0x94d   : > { %v1620_v20 = vpop.f32.mrf.mxu3 }
 0x94e   : > { %v1626_v22 = vadd.f32 %v1625_v19, %v1619_v16 }
 0x950   : > { %v1627_v23 = vmul.f32 0.7978846, %v1626_v22 }
 0x952   : > { %2299 = vtanh.f32 %v1627_v23 }
 0x958   : > { %v2300_v24 = vpop.eup %2299 }
 0x959   : > { %v1629_v26 = vadd.f32 1.0, %v2300_v24 }
 0x95b   : > { %v1630_v27 = vmul.f32 %v1629_v26, %v1622_v25 }
 0x95d   : > { %v1631_v28 = vpack.c.bf16 %v1630_v27, %v1630_v27 }
 0x95f   : > { %2146 = vmatmul.msk.bf16.vlgmr.msra.gmra.mxu0 %vm1668_vm12, %v1631_v28 }
 0x9dc   : > { %v1681_v31 = vpop.f32.mrf.mxu0 }
 0x9dd   : > { %v1682_v32 = vadd.f32 %v2284_v30, %v1681_v31 }
 0x9df   : > { %v1685_v21 = vadd.f32 %v1682_v32, %v1584_v8 }
 0x9e1   : > { %v1688_v33 = vsel %vm1157_vm5, %v1685_v21, 0.0 }
 0x9e2   : > { %1689 = vadd.xlane.f32.xlu2 %v1688_v33 }
 0x9e4   : > { %v1683_v34 = vpop.f32.mrf.mxu0 }
 0xa55   : > { %v1690_v35 = vpop.xlane.xlu2 %1689 }
 0xa56   : > { %v1691_v36 = vmul.f32 %v1690_v35, %v2761_v51 }
 0xa58   : > { %v1692_v37 = vsub.f32 %v1685_v21, %v1691_v36 }
 0xa5a   : > { %v1693_v38 = vmul.f32 %v1692_v37, %v1692_v37 }
 0xa5c   : > { %v1694_v39 = vsel %vm1157_vm5, %v1693_v38, 0.0 }
 0xa5d   : > { %1695 = vadd.xlane.f32.xlu2 %v1694_v39 }
 0xad0   : > { %v1696_v40 = vpop.xlane.xlu2 %1695 }
 0xad1   : > { %v1697_v41 = vmul.f32 %v1696_v40, %v2761_v51  ;;  %v2286_v51 = vld [vmem:[%s1035_s14] ss:$0 sm:$0xff] }
 0xad3   : > { %v1698_v42 = vadd.f32 1e-12, %v1697_v41 }
 0xad5   : > { %2301 = vrsqrt.f32 %v1698_v42  ;;  %vm1705_vm14 = vweird.f32 %v1698_v42 }
 0xadb   : > { %v2302_v43 = vpop.eup %2301 }
 0xadc   : > { %v1700_v44 = vmul.f32 %v2302_v43, %v1698_v42  ;;  %vm1706_vm13 = vweird.f32 %v2302_v43 }
 0xadd   : > { %vm1707_vm15 = vmor %vm1705_vm14, %vm1706_vm13 }
 0xade   : > { %v1701_v45 = vmul.f32 %v2302_v43, %v1700_v44 }
 0xae0   : > { %v1702_v46 = vmul.f32 0.5, %v1701_v45 }
 0xae2   : > { %v1703_v47 = vsub.f32 1.5, %v1702_v46 }
 0xae4   : > { %v1704_v48 = vmul.f32 %v2302_v43, %v1703_v47 }
 0xae6   : > { %v1708_v50 = vsel %vm1707_vm15, %v2302_v43, %v1704_v48 }
 0xae7   : > { %v1709_v52 = vmul.f32 %v1708_v50, %v1692_v37 }
 0xae9   : > { %v1713_v29 = vmul.f32 %v2285_v49, %v1709_v52  ;;  %1722 = sbr.rel (%p2147_p1) target bundleno = 3077 (0xc05), region = 124 }
 0xaeb   : > { %v1717_v53 = vadd.f32 %v2286_v51, %v1713_v29 }
 0xaed   : > { %1718 = vst.msk [vmem:[#allocation2] sm:$0xff] %vm1157_vm5, %v1717_v53 }
 0xaee   : > { %v2192_v54 = vld [vmem:[%s2990_s13 + $0x8] sm:$0xff]  ;;  %v2191_v55 = vld [vmem:[%s2990_s13] sm:$0xff]  ;;  %v1723_v56 = vpack.c.bf16 %v1717_v53, %v1717_v53 }
 0xaef   : > { %1750 = vmatpush.bf16.msra.mxu0 %v2192_v54  ;;  %v2194_v57 = vld [vmem:[%s2991_s9 + $0x8] sm:$0xff]  ;;  %v2193_v58 = vld [vmem:[%s2991_s9] sm:$0xff] }
 0xaf0   : > { %1785 = vmatpush.bf16.msra.mxu1 %v2194_v57  ;;  %v1728_v59 = vld [vmem:[%s2992_s30] sm:$0x1] }
 0xaf1   : > { %v1763_v1 = vld [vmem:[%s2993_s27] sm:$0x1] }
 0xaf3   : > { %1751 = vmatpush.bf16.msra.mxu0 %v2191_v55 }
 0xaf4   : > { %1786 = vmatpush.bf16.msra.mxu1 %v2193_v58 }
 0xaf6   : > { %2156 = vmatmul.msk.bf16.vlgmr.msra.gmra.mxu0 %vm1157_vm5, %v1723_v56 }
 0xb73   : > { %v1753_v60 = vpop.f32.mrf.mxu0 }
 0xb74   : > { %v1754_v61 = vadd.f32 %v1753_v60, %v1728_v59 }
 0xb76   : > { %2303 = vtanh.f32 %v1754_v61 }
 0xb7b   : > { %v1755_v62 = vpop.f32.mrf.mxu0 }
 0xb7c   : > { %v2304_v63 = vpop.eup %2303 }
 0xb7d   : > { %v1758_v0 = vpack.c.bf16 %v2304_v63, %v2304_v63 }
 0xb7f   : > { %2165 = vmatmul.msk.bf16.vlgmr.msra.gmra.mxu1 %vm1157_vm5, %v1758_v0 }
 0xbfc   : > { %v1788_v2 = vpop.f32.mrf.mxu1 }
 0xbfd   : > { %v1789_v3 = vadd.f32 %v1788_v2, %v1763_v1 }
 0xbff   : > { %1792 = vst [vmem:[%s2692_s25] sm:$0x1] %v1789_v3 }
 0xc04   : > { %v1790_v4 = vpop.f32.mrf.mxu1 }
 0xc05 PF: > { %s2994_s5 = sld [smem:[#allocation9_spill]]  ;;  %s1804_s24 = sshll.u32 %s2692_s25, 4  ;;  %s1805_s24 = int_to_ptr.vmem [resolvable:$true] %s1804_s24 }
 0xc06   : > { %s2995_s6 = sld [smem:[#allocation42_spill]]  ;;  %s2998_s28 = sand.u32 1, %s2375_s26  }
 0xc07   : > { %s1794_s3 = scalar_lea.sflag [#allocation4], %s2998_s28 }
 0xc0c   : > { %s2996_s18 = smov %s2995_s6  ;;  %s1802_s20 = scalar_lea.hbm %s2995_s6, %s2994_s5 }
 0xc0d   : > { %s1806_s19 = sshll.u32 %s1802_s20, 4  ;;  %s2325_s0 = scalar_lea.hbm %s2996_s18, 2  ;;  %s1807_s19 = int_to_ptr.hbm [resolvable:$true] %s1806_s19 }
 0xc0e   : > { %s2319_s21 = sshra.s32 %s1807_s19, 4  ;;  %s2320_s21 = int_to_ptr.hbm [resolvable:$true] %s2319_s21 }
 0xc0f   : > { %s2321_s14 = scalar_lea.hbm %s2320_s21, 1  ;;  %p2326_p6 = scmp.lt.s32.totalorder %s2320_s21, %s2996_s18 }
 0xc10   : > { %p2322_p2 = scmp.ne.s32.totalorder %s2320_s21, %s2321_s14  ;;  %p2327_p7 = scmp.lt.s32.totalorder %s2325_s0, %s2321_s14 }
 0xc12   : > { %p2323_p4 = pnand %p2322_p2, %p2578_p3  ;;  %p2328_p8 = por %p2327_p7, %p2326_p6 }
 0xc14   : > { %p2324_p5 = pneg %p2323_p4 }
 0xc16   : > { %p2329_p10 = pnand %p2328_p8, %p2324_p5 }
 0xc18   : > { %2332 = shalt.err (!%p2329_p10)
}
 0xc19   : > { %2195 = dma.vmem_to_hbm [thread:$0]  (%p2578_p3), %s1805_s24, 16, %s1807_s19, %s1794_s3  }
 0xc1a PF: > { %s2999_s25 = sld [smem:[#allocation12_spill]] }
 0xc1b   : > { %s3000_s30 = sld [smem:[#allocation6_spill]] }
 0xc20   : > { %p2201_p11 = scmp.ge.s32.totalorder %s2999_s25, 2 }
 0xc21   : > { %s1818_s2 = sand.u32 1, %s3000_s30  }
 0xc22   : > { %p2198_p12 = pnand %p2201_p11, %p2588_p9  ;;  %s1819_s27 = scalar_lea.sflag [#allocation4], %s1818_s2 }
 0xc24   : > { %p2199_p13 = pneg %p2198_p12 }
 0xc26   : > { %2366 = dma.done.wait (%p2199_p13), %s1819_s27, 16  }
 0xc27   : > { %2368 = vsyncadd (%p2199_p13), %s1819_s27, 4294967280  ;;  %s37_s0 = sadd.s32 1, %s2999_s25   ;;  %s3002_s10 = sld [smem:[#allocation7_spill]] }
 0xc28   : > { %p34_p0 = scmp.ge.s32.totalorder %s37_s0, 6   ;;  %s3003_s27 = sld [smem:[#allocation17_spill]] }
 0xc29   : > { %s3004_s28 = sld [smem:[#allocation10_spill]]  ;;  %s3008_s5 = smov %s2375_s26 }
 0xc2a   : > { %s3005_s6 = sld [smem:[#allocation11_spill]]  ;;  %36 = sbr.rel (!%p34_p0) target bundleno = 26 (0x1a), region = 210 }
 0xc2b   : > { %s3006_s2 = sld [smem:[#allocation13_spill]] }
 0xc2c   : > { %s3007_s29 = sld [smem:[#allocation15_spill]] }
 0xc2d   : > { %s3009_s26 = smov %s3002_s10 }
 0xc2f   :  { %1824 = vsyncpa [#allocation4], 1 }
 0xc30   :  { %1826 = vsyncpa [#allocation4 + $0x1], 1 }

</bundles_post_ra>
